<compile_context>
chip_gen: v6e
topology: v6e:2x2x1
jax: 0.10.0
libtpu: 0.0.40
codegen_flags: <defaults>
</compile_context>

<pallas_src>
import functools
import math

import jax
import jax.numpy as jnp
from jax.experimental import pallas as pl
from jax.experimental.pallas import tpu as pltpu

_VMEM_LIMIT = 48 * 1024 * 1024   # safe for v7x (64 MiB physical) and v5e/v6e
_NEG_INF = -1e30                 # finite stand-in for -inf (no NaN on fully-masked rows)


# ---------------------------------------------------------------------------
# In-kernel helpers (pure jnp, traced inside the Pallas kernels)
# ---------------------------------------------------------------------------

def _gelu_tanh(x):
    c = math.sqrt(2.0 / math.pi)
    return 0.5 * x * (1.0 + jnp.tanh(c * (x + 0.044715 * x * x * x)))


def _layernorm(y, g, b, eps=1e-5):
    mean = jnp.mean(y, axis=-1, keepdims=True)
    c = y - mean
    var = jnp.mean(c * c, axis=-1, keepdims=True)
    return c * jax.lax.rsqrt(var + eps) * g + b


def _mha_core(q_full, k_full, v_full, bias, wo, *, n_heads, dh, scale):
    """Multi-head attention + output projection (no bias), per-head accumulated.

    q_full [Tq, D], k_full/v_full [Tk, D] (any float dtype; cast to bf16 here),
    bias broadcastable to [Tq, Tk] f32, wo [D, D] bf16.  Returns f32 [Tq, D]:
        concat_h(softmax(q_h k_h^T * scale + bias) v_h) @ wo
      = sum_h  (softmax(...) v_h) @ wo[h*dh:(h+1)*dh, :]
    """
    Tq = q_full.shape[0]
    D = n_heads * dh
    q_full = q_full.astype(jnp.bfloat16)
    k_full = k_full.astype(jnp.bfloat16)
    v_full = v_full.astype(jnp.bfloat16)
    acc = jnp.zeros((Tq, D), jnp.float32)
    for h in range(n_heads):
        lo, hi = h * dh, (h + 1) * dh
        # contract last dims of q and k directly (no k.T relayout)
        s = jax.lax.dot_general(
            q_full[:, lo:hi], k_full[:, lo:hi],
            (((1,), (1,)), ((), ())),
            preferred_element_type=jnp.float32)
        s = s * scale + bias
        s_max = jnp.max(s, axis=-1, keepdims=True)
        p = jnp.exp(s - s_max)
        p = p * pl.reciprocal(jnp.sum(p, axis=-1, keepdims=True), approx=True)
        o_h = jnp.dot(p.astype(jnp.bfloat16), v_full[:, lo:hi],
                      preferred_element_type=jnp.float32)
        acc = acc + jnp.dot(o_h.astype(jnp.bfloat16), wo[lo:hi, :],
                            preferred_element_type=jnp.float32)
    return acc


# ---------------------------------------------------------------------------
# Pallas kernels
# ---------------------------------------------------------------------------

def _self_attn_block_kernel(x_ref, w_in_ref, b_in_ref, mask_ref,
                            wo_ref, bo_ref, g_ref, beta_ref, o_ref,
                            *, n_heads, dh, scale):
    # Fused: LayerNorm(x + SelfAttn(x) @ Wo + bo), QKV projection included.
    # x: [1,T,D] f32, w_in: [D,3D] bf16, b_in: [1,3D] f32, mask: [T,T] f32,
    # wo: [D,D] bf16, bo/g/beta: [1,D] f32 -> o: [1,T,D] f32
    D = n_heads * dh
    x = x_ref[0]                                              # [T, D] f32
    qkv = jnp.dot(x.astype(jnp.bfloat16), w_in_ref[...],
                  preferred_element_type=jnp.float32) + b_in_ref[...]
    attn = _mha_core(qkv[:, 0:D], qkv[:, D:2 * D], qkv[:, 2 * D:3 * D],
                     mask_ref[...], wo_ref[...],
                     n_heads=n_heads, dh=dh, scale=scale)
    y = x + attn + bo_ref[...]
    o_ref[0] = _layernorm(y, g_ref[...], beta_ref[...])


def _cross_attn_block_kernel(x_ref, mem_ref, wq_ref, bq_ref, wkv_ref, bkv_ref,
                             pad_ref, wo_ref, bo_ref, g_ref, beta_ref, o_ref,
                             *, n_heads, dh, scale):
    # Fused: LayerNorm(x + CrossAttn(x, mem) @ Wo + bo), Q/KV proj included.
    # x: [1,T,D] f32, mem: [1,S,D] bf16, wq: [D,D], wkv: [D,2D] bf16,
    # pad: [1,1,S] f32 additive bias, wo: [D,D] bf16 -> o: [1,T,D] f32
    D = n_heads * dh
    x = x_ref[0]                                              # [T, D] f32
    m = mem_ref[0]                                            # [S, D] bf16
    q = jnp.dot(x.astype(jnp.bfloat16), wq_ref[...],
                preferred_element_type=jnp.float32) + bq_ref[...]
    kv = jnp.dot(m, wkv_ref[...],
                 preferred_element_type=jnp.float32) + bkv_ref[...]
    attn = _mha_core(q, kv[:, 0:D], kv[:, D:2 * D],
                     pad_ref[0], wo_ref[...],
                     n_heads=n_heads, dh=dh, scale=scale)
    y = x + attn + bo_ref[...]
    o_ref[0] = _layernorm(y, g_ref[...], beta_ref[...])


def _ffn_block_kernel(x_ref, w1_ref, b1_ref, w2_ref, b2_ref,
                      g_ref, beta_ref, o_ref):
    # LayerNorm(x + linear2(gelu(linear1(x)))) — fully fused FFN block.
    x = x_ref[...]                                            # [tm, D] f32
    h = jnp.dot(x.astype(jnp.bfloat16), w1_ref[...],
                preferred_element_type=jnp.float32) + b1_ref[...]
    h = _gelu_tanh(h)
    ff = jnp.dot(h.astype(jnp.bfloat16), w2_ref[...],
                 preferred_element_type=jnp.float32) + b2_ref[...]
    o_ref[...] = _layernorm(x + ff, g_ref[...], beta_ref[...])


# ---------------------------------------------------------------------------
# Pallas wrappers
# ---------------------------------------------------------------------------

def _row_tile(m, target=256):
    """Pick a row tile that divides m (multiple of 8 where possible)."""
    if m <= target:
        return m
    t = (target // 8) * 8
    while t >= 8:
        if m % t == 0:
            return t
        t -= 8
    return m


def self_attention_block(x, mask2d, p, n_heads):
    # LayerNorm(x + SelfAttn(x) @ Wo + bo), QKV projection fused in-kernel.
    B, T, D = x.shape
    dh = D // n_heads
    kernel = functools.partial(_self_attn_block_kernel,
                               n_heads=n_heads, dh=dh,
                               scale=1.0 / math.sqrt(dh))
    return pl.pallas_call(
        kernel,
        grid=(B,),
        in_specs=[
            pl.BlockSpec((1, T, D), lambda b: (b, 0, 0)),       # x (proj input + residual)
            pl.BlockSpec((D, 3 * D), lambda b: (0, 0)),         # W_in (resident)
            pl.BlockSpec((1, 3 * D), lambda b: (0, 0)),
            pl.BlockSpec((T, T), lambda b: (0, 0)),             # one causal mask for all b
            pl.BlockSpec((D, D), lambda b: (0, 0)),             # Wo
            pl.BlockSpec((1, D), lambda b: (0, 0)),
            pl.BlockSpec((1, D), lambda b: (0, 0)),
            pl.BlockSpec((1, D), lambda b: (0, 0)),
        ],
        out_specs=pl.BlockSpec((1, T, D), lambda b: (b, 0, 0)),
        out_shape=jax.ShapeDtypeStruct((B, T, D), jnp.float32),
        compiler_params=pltpu.CompilerParams(
            dimension_semantics=("parallel",),
            vmem_limit_bytes=_VMEM_LIMIT),
    )(x, p["sa_in_w"], p["sa_in_b"], mask2d,
      p["sa_out_w"], p["sa_out_b"], p["ln1_g"], p["ln1_b"])


def cross_attention_block(x, mem_bf16, pad_bias, p, n_heads):
    # LayerNorm(x + CrossAttn(x, mem) @ Wo + bo), Q/KV projections fused in-kernel.
    B, T, D = x.shape
    S = mem_bf16.shape[1]
    dh = D // n_heads
    kernel = functools.partial(_cross_attn_block_kernel,
                               n_heads=n_heads, dh=dh,
                               scale=1.0 / math.sqrt(dh))
    return pl.pallas_call(
        kernel,
        grid=(B,),
        in_specs=[
            pl.BlockSpec((1, T, D), lambda b: (b, 0, 0)),       # x
            pl.BlockSpec((1, S, D), lambda b: (b, 0, 0)),       # mem (bf16)
            pl.BlockSpec((D, D), lambda b: (0, 0)),             # Wq
            pl.BlockSpec((1, D), lambda b: (0, 0)),
            pl.BlockSpec((D, 2 * D), lambda b: (0, 0)),         # Wkv
            pl.BlockSpec((1, 2 * D), lambda b: (0, 0)),
            pl.BlockSpec((1, 1, S), lambda b: (b, 0, 0)),       # tiny additive pad bias
            pl.BlockSpec((D, D), lambda b: (0, 0)),             # Wo
            pl.BlockSpec((1, D), lambda b: (0, 0)),
            pl.BlockSpec((1, D), lambda b: (0, 0)),
            pl.BlockSpec((1, D), lambda b: (0, 0)),
        ],
        out_specs=pl.BlockSpec((1, T, D), lambda b: (b, 0, 0)),
        out_shape=jax.ShapeDtypeStruct((B, T, D), jnp.float32),
        compiler_params=pltpu.CompilerParams(
            dimension_semantics=("parallel",),
            vmem_limit_bytes=_VMEM_LIMIT),
    )(x, mem_bf16, p["ca_q_w"], p["ca_q_b"], p["ca_kv_w"], p["ca_kv_b"],
      pad_bias, p["ca_out_w"], p["ca_out_b"], p["ln2_g"], p["ln2_b"])


def ffn_block(x, p):
    B, T, D = x.shape
    M = B * T
    F = p["w1"].shape[1]
    tm = _row_tile(M)
    out = pl.pallas_call(
        _ffn_block_kernel,
        grid=(M // tm,),
        in_specs=[
            pl.BlockSpec((tm, D), lambda i: (i, 0)),
            pl.BlockSpec((D, F), lambda i: (0, 0)),
            pl.BlockSpec((1, F), lambda i: (0, 0)),
            pl.BlockSpec((F, D), lambda i: (0, 0)),
            pl.BlockSpec((1, D), lambda i: (0, 0)),
            pl.BlockSpec((1, D), lambda i: (0, 0)),
            pl.BlockSpec((1, D), lambda i: (0, 0)),
        ],
        out_specs=pl.BlockSpec((tm, D), lambda i: (i, 0)),
        out_shape=jax.ShapeDtypeStruct((M, D), jnp.float32),
        compiler_params=pltpu.CompilerParams(
            dimension_semantics=("parallel",),
            vmem_limit_bytes=_VMEM_LIMIT),
    )(x.reshape(M, D), p["w1"], p["b1"], p["w2"], p["b2"], p["ln3_g"], p["ln3_b"])
    return out.reshape(B, T, D)


# ---------------------------------------------------------------------------
# Decoder forward (glue in plain JAX, compute in kernels)
# ---------------------------------------------------------------------------

def _prep_layer(p, D):
    """Cast matmul weights to bf16 for the MXU; split cross in_proj into q / kv."""
    return {
        "sa_in_w": p["sa_in_w"].astype(jnp.bfloat16),
        "sa_in_b": p["sa_in_b"],
        "sa_out_w": p["sa_out_w"].astype(jnp.bfloat16),
        "sa_out_b": p["sa_out_b"],
        "ca_q_w": p["ca_in_w"][:, :D].astype(jnp.bfloat16),
        "ca_q_b": p["ca_in_b"][:, :D],
        "ca_kv_w": p["ca_in_w"][:, D:].astype(jnp.bfloat16),
        "ca_kv_b": p["ca_in_b"][:, D:],
        "ca_out_w": p["ca_out_w"].astype(jnp.bfloat16),
        "ca_out_b": p["ca_out_b"],
        "w1": p["w1"].astype(jnp.bfloat16),
        "b1": p["b1"],
        "w2": p["w2"].astype(jnp.bfloat16),
        "b2": p["b2"],
        "ln1_g": p["ln1_g"], "ln1_b": p["ln1_b"],
        "ln2_g": p["ln2_g"], "ln2_b": p["ln2_b"],
        "ln3_g": p["ln3_g"], "ln3_b": p["ln3_b"],
    }


@functools.partial(jax.jit, static_argnums=(5,))
def tr_decoder_forward(embs, mem, seq_mask, pad_mask, params, n_heads):
    """Equivalent of TrDecoder.forward (eval mode, dropout = identity)."""
    B, T, D = embs.shape
    S = mem.shape[1]

    # Additive masks with a large finite negative instead of -inf (NaN-safe).
    mask2d = jnp.maximum(seq_mask.astype(jnp.float32), _NEG_INF)            # [T, T]
    if pad_mask is not None:
        pad_bias = jnp.where(pad_mask, _NEG_INF, 0.0).astype(jnp.float32)[:, None, :]
    else:
        pad_bias = jnp.zeros((B, 1, S), jnp.float32)                         # [B, 1, S]

    # mem is only consumed by bf16 matmuls -> cast once, halve its HBM traffic.
    mem_bf16 = mem.astype(jnp.bfloat16)

    x = embs
    for p_raw in params:
        p = _prep_layer(p_raw, D)
        x = self_attention_block(x, mask2d, p, n_heads)            # LN(x + SA(x))
        x = cross_attention_block(x, mem_bf16, pad_bias, p, n_heads)  # LN(x + CA(x, mem))
        x = ffn_block(x, p)                                        # LN(x + FFN(x))
    return x


def generate_square_subsequent_mask(sz):
    # Same semantics as TrDecoder.generate_square_subsequent_mask
    i = jnp.arange(sz)[:, None]
    j = jnp.arange(sz)[None, :]
    return jnp.where(j <= i, 0.0, -jnp.inf).astype(jnp.float32)


# ---------------------------------------------------------------------------
# Deterministic parameter init (shapes from nn.TransformerDecoderLayer)
# ---------------------------------------------------------------------------

def init_params(key, depth, d_model, d_ff):
    params = []
    scale = 0.05
    for _ in range(depth):
        keys = jax.random.split(key, 9)
        key = keys[0]
        p = {
            # self-attention (weights stored transposed: [in, out])
            "sa_in_w": scale * jax.random.normal(keys[1], (d_model, 3 * d_model), jnp.float32),
            "sa_in_b": jnp.zeros((1, 3 * d_model), jnp.float32),
            "sa_out_w": scale * jax.random.normal(keys[2], (d_model, d_model), jnp.float32),
            "sa_out_b": jnp.zeros((1, d_model), jnp.float32),
            # cross-attention
            "ca_in_w": scale * jax.random.normal(keys[3], (d_model, 3 * d_model), jnp.float32),
            "ca_in_b": jnp.zeros((1, 3 * d_model), jnp.float32),
            "ca_out_w": scale * jax.random.normal(keys[4], (d_model, d_model), jnp.float32),
            "ca_out_b": jnp.zeros((1, d_model), jnp.float32),
            # feed-forward
            "w1": scale * jax.random.normal(keys[5], (d_model, d_ff), jnp.float32),
            "b1": 0.01 * jax.random.normal(keys[6], (1, d_ff), jnp.float32),
            "w2": scale * jax.random.normal(keys[7], (d_ff, d_model), jnp.float32),
            "b2": 0.01 * jax.random.normal(keys[8], (1, d_model), jnp.float32),
            # layer norms (PyTorch default init: gamma=1, beta=0)
            "ln1_g": jnp.ones((1, d_model), jnp.float32),
            "ln1_b": jnp.zeros((1, d_model), jnp.float32),
            "ln2_g": jnp.ones((1, d_model), jnp.float32),
            "ln2_b": jnp.zeros((1, d_model), jnp.float32),
            "ln3_g": jnp.ones((1, d_model), jnp.float32),
            "ln3_b": jnp.zeros((1, d_model), jnp.float32),
        }
        params.append(p)
    return params


# ---------------------------------------------------------------------------
# Main
# ---------------------------------------------------------------------------

if __name__ == "__main__":
    # Small but TPU-friendly shapes (last dim a multiple of 128, head dim 32).
    B, T, S = 2, 8, 8          # batch, target seq, memory seq
    D, H, FF, DEPTH = 128, 4, 256, 2

    key = jax.random.PRNGKey(0)
    k_emb, k_mem, k_par = jax.random.split(key, 3)

    embs = jax.random.normal(k_emb, (B, T, D), jnp.float32)   # [B, T, D]
    mem = jax.random.normal(k_mem, (B, S, D), jnp.float32)    # [B, S, D]
    seq_mask = generate_square_subsequent_mask(T)             # [T, T] additive
    # memory_key_padding_mask: True = padded position (ignored by cross-attn)
    pad_mask = jnp.array(
        [[False] * S,
         [False] * (S - 2) + [True, True]], dtype=bool)       # [B, S]

    params = init_params(k_par, DEPTH, D, FF)

    out = tr_decoder_forward(embs, mem, seq_mask, pad_mask, params, H)
    out = jax.block_until_ready(out)

    assert out.shape == (B, T, D), out.shape
    assert bool(jnp.all(jnp.isfinite(out)))
    print("KERNEL_OK")
</pallas_src>

<mosaic_0001>
module attributes {stable_mosaic.version = 11 : i64} {
  func.func @_self_attn_block_kernel(%arg0: i32, %arg1: memref<1x8x128xf32, #tpu.memory_space<vmem>>, %arg2: memref<128x384xbf16, #tpu.memory_space<vmem>>, %arg3: memref<1x384xf32, #tpu.memory_space<vmem>>, %arg4: memref<8x8xf32, #tpu.memory_space<vmem>>, %arg5: memref<128x128xbf16, #tpu.memory_space<vmem>>, %arg6: memref<1x128xf32, #tpu.memory_space<vmem>>, %arg7: memref<1x128xf32, #tpu.memory_space<vmem>>, %arg8: memref<1x128xf32, #tpu.memory_space<vmem>>, %arg9: memref<1x8x128xf32, #tpu.memory_space<vmem>>) attributes {dimension_semantics = [#tpu.dimension_semantics<parallel>], iteration_bounds = array<i64: 2>, scalar_prefetch = 0 : i64, scratch_operands = 0 : i64, tpu.core_type = #tpu.core_type<tc>, window_params = [{transform_indices = @transform_0, window_bounds = array<i64: 1, 8, 128>}, {pipeline_mode = #tpu.pipeline_mode<synchronous>, transform_indices = @transform_1, window_bounds = array<i64: 128, 384>}, {pipeline_mode = #tpu.pipeline_mode<synchronous>, transform_indices = @transform_2, window_bounds = array<i64: 1, 384>}, {pipeline_mode = #tpu.pipeline_mode<synchronous>, transform_indices = @transform_3, window_bounds = array<i64: 8, 8>}, {pipeline_mode = #tpu.pipeline_mode<synchronous>, transform_indices = @transform_4, window_bounds = array<i64: 128, 128>}, {pipeline_mode = #tpu.pipeline_mode<synchronous>, transform_indices = @transform_5, window_bounds = array<i64: 1, 128>}, {pipeline_mode = #tpu.pipeline_mode<synchronous>, transform_indices = @transform_6, window_bounds = array<i64: 1, 128>}, {pipeline_mode = #tpu.pipeline_mode<synchronous>, transform_indices = @transform_7, window_bounds = array<i64: 1, 128>}, {transform_indices = @transform_8, window_bounds = array<i64: 1, 8, 128>}]} {
    %c0 = arith.constant 0 : index
    %c0_0 = arith.constant 0 : index
    %c0_1 = arith.constant 0 : index
    %0 = vector.load %arg1[%c0, %c0_0, %c0_1] : memref<1x8x128xf32, #tpu.memory_space<vmem>>, vector<1x8x128xf32>
    %1 = vector.shape_cast %0 : vector<1x8x128xf32> to vector<8x128xf32>
    %2 = arith.truncf %1 : vector<8x128xf32> to vector<8x128xbf16>
    %c0_2 = arith.constant 0 : index
    %c0_3 = arith.constant 0 : index
    %3 = vector.load %arg2[%c0_2, %c0_3] : memref<128x384xbf16, #tpu.memory_space<vmem>>, vector<128x384xbf16>
    %cst = arith.constant dense<0.000000e+00> : vector<8x384xf32>
    %4 = tpu.matmul %2, %3, %cst {dimension_numbers = #tpu.dot_dimension_numbers<[1], [0], [0], [1], [0, 0, 1, 1], [], []>} : vector<8x128xbf16>, vector<128x384xbf16>, vector<8x384xf32> -> vector<8x384xf32>
    %c0_4 = arith.constant 0 : index
    %c0_5 = arith.constant 0 : index
    %5 = vector.load %arg3[%c0_4, %c0_5] : memref<1x384xf32, #tpu.memory_space<vmem>>, vector<1x384xf32>
    %6 = vector.broadcast %5 : vector<1x384xf32> to vector<8x384xf32>
    %7 = arith.addf %4, %6 : vector<8x384xf32>
    %8 = vector.extract_strided_slice %7 {offsets = [0, 0], sizes = [8, 128], strides = [1, 1]} : vector<8x384xf32> to vector<8x128xf32>
    %9 = vector.extract_strided_slice %7 {offsets = [0, 128], sizes = [8, 128], strides = [1, 1]} : vector<8x384xf32> to vector<8x128xf32>
    %10 = vector.extract_strided_slice %7 {offsets = [0, 256], sizes = [8, 128], strides = [1, 1]} : vector<8x384xf32> to vector<8x128xf32>
    %c0_6 = arith.constant 0 : index
    %c0_7 = arith.constant 0 : index
    %11 = vector.load %arg4[%c0_6, %c0_7] : memref<8x8xf32, #tpu.memory_space<vmem>>, vector<8x8xf32>
    %c0_8 = arith.constant 0 : index
    %c0_9 = arith.constant 0 : index
    %12 = vector.load %arg5[%c0_8, %c0_9] : memref<128x128xbf16, #tpu.memory_space<vmem>>, vector<128x128xbf16>
    %13 = arith.truncf %8 : vector<8x128xf32> to vector<8x128xbf16>
    %14 = arith.truncf %9 : vector<8x128xf32> to vector<8x128xbf16>
    %15 = arith.truncf %10 : vector<8x128xf32> to vector<8x128xbf16>
    %cst_10 = arith.constant 0.000000e+00 : f32
    %16 = vector.broadcast %cst_10 : f32 to vector<8x128xf32>
    %17 = vector.extract_strided_slice %13 {offsets = [0, 0], sizes = [8, 32], strides = [1, 1]} : vector<8x128xbf16> to vector<8x32xbf16>
    %18 = vector.extract_strided_slice %14 {offsets = [0, 0], sizes = [8, 32], strides = [1, 1]} : vector<8x128xbf16> to vector<8x32xbf16>
    %cst_11 = arith.constant dense<0.000000e+00> : vector<8x8xf32>
    %19 = tpu.matmul %17, %18, %cst_11 {dimension_numbers = #tpu.dot_dimension_numbers<[1], [1], [0], [0], [0, 0, 1, 0], [], []>} : vector<8x32xbf16>, vector<8x32xbf16>, vector<8x8xf32> -> vector<8x8xf32>
    %cst_12 = arith.constant 0.176776692 : f32
    %20 = vector.broadcast %cst_12 : f32 to vector<8x8xf32>
    %21 = arith.mulf %19, %20 : vector<8x8xf32>
    %22 = arith.addf %21, %11 : vector<8x8xf32>
    %cst_13 = arith.constant dense<0xFF800000> : vector<8xf32>
    %23 = vector.multi_reduction <maximumf>, %22, %cst_13 [1] : vector<8x8xf32> to vector<8xf32>
    %24 = vector.shape_cast %23 : vector<8xf32> to vector<8x1xf32>
    %25 = vector.broadcast %24 : vector<8x1xf32> to vector<8x8xf32>
    %26 = arith.subf %22, %25 : vector<8x8xf32>
    %27 = math.exp %26 : vector<8x8xf32>
    %cst_14 = arith.constant dense<0.000000e+00> : vector<8xf32>
    %28 = vector.multi_reduction <add>, %27, %cst_14 [1] : vector<8x8xf32> to vector<8xf32>
    %29 = vector.shape_cast %28 : vector<8xf32> to vector<8x1xf32>
    %30 = tpu.reciprocal %29 {approx = true} : vector<8x1xf32> -> vector<8x1xf32>
    %31 = vector.broadcast %30 : vector<8x1xf32> to vector<8x8xf32>
    %32 = arith.mulf %27, %31 : vector<8x8xf32>
    %33 = arith.truncf %32 : vector<8x8xf32> to vector<8x8xbf16>
    %34 = vector.extract_strided_slice %15 {offsets = [0, 0], sizes = [8, 32], strides = [1, 1]} : vector<8x128xbf16> to vector<8x32xbf16>
    %cst_15 = arith.constant dense<0.000000e+00> : vector<8x32xf32>
    %35 = tpu.matmul %33, %34, %cst_15 {dimension_numbers = #tpu.dot_dimension_numbers<[1], [0], [0], [1], [0, 0, 1, 1], [], []>} : vector<8x8xbf16>, vector<8x32xbf16>, vector<8x32xf32> -> vector<8x32xf32>
    %36 = arith.truncf %35 : vector<8x32xf32> to vector<8x32xbf16>
    %37 = vector.extract_strided_slice %12 {offsets = [0, 0], sizes = [32, 128], strides = [1, 1]} : vector<128x128xbf16> to vector<32x128xbf16>
    %cst_16 = arith.constant dense<0.000000e+00> : vector<8x128xf32>
    %38 = tpu.matmul %36, %37, %cst_16 {dimension_numbers = #tpu.dot_dimension_numbers<[1], [0], [0], [1], [0, 0, 1, 1], [], []>} : vector<8x32xbf16>, vector<32x128xbf16>, vector<8x128xf32> -> vector<8x128xf32>
    %39 = arith.addf %16, %38 : vector<8x128xf32>
    %40 = vector.extract_strided_slice %13 {offsets = [0, 32], sizes = [8, 32], strides = [1, 1]} : vector<8x128xbf16> to vector<8x32xbf16>
    %41 = vector.extract_strided_slice %14 {offsets = [0, 32], sizes = [8, 32], strides = [1, 1]} : vector<8x128xbf16> to vector<8x32xbf16>
    %cst_17 = arith.constant dense<0.000000e+00> : vector<8x8xf32>
    %42 = tpu.matmul %40, %41, %cst_17 {dimension_numbers = #tpu.dot_dimension_numbers<[1], [1], [0], [0], [0, 0, 1, 0], [], []>} : vector<8x32xbf16>, vector<8x32xbf16>, vector<8x8xf32> -> vector<8x8xf32>
    %cst_18 = arith.constant 0.176776692 : f32
    %43 = vector.broadcast %cst_18 : f32 to vector<8x8xf32>
    %44 = arith.mulf %42, %43 : vector<8x8xf32>
    %45 = arith.addf %44, %11 : vector<8x8xf32>
    %cst_19 = arith.constant dense<0xFF800000> : vector<8xf32>
    %46 = vector.multi_reduction <maximumf>, %45, %cst_19 [1] : vector<8x8xf32> to vector<8xf32>
    %47 = vector.shape_cast %46 : vector<8xf32> to vector<8x1xf32>
    %48 = vector.broadcast %47 : vector<8x1xf32> to vector<8x8xf32>
    %49 = arith.subf %45, %48 : vector<8x8xf32>
    %50 = math.exp %49 : vector<8x8xf32>
    %cst_20 = arith.constant dense<0.000000e+00> : vector<8xf32>
    %51 = vector.multi_reduction <add>, %50, %cst_20 [1] : vector<8x8xf32> to vector<8xf32>
    %52 = vector.shape_cast %51 : vector<8xf32> to vector<8x1xf32>
    %53 = tpu.reciprocal %52 {approx = true} : vector<8x1xf32> -> vector<8x1xf32>
    %54 = vector.broadcast %53 : vector<8x1xf32> to vector<8x8xf32>
    %55 = arith.mulf %50, %54 : vector<8x8xf32>
    %56 = arith.truncf %55 : vector<8x8xf32> to vector<8x8xbf16>
    %57 = vector.extract_strided_slice %15 {offsets = [0, 32], sizes = [8, 32], strides = [1, 1]} : vector<8x128xbf16> to vector<8x32xbf16>
    %cst_21 = arith.constant dense<0.000000e+00> : vector<8x32xf32>
    %58 = tpu.matmul %56, %57, %cst_21 {dimension_numbers = #tpu.dot_dimension_numbers<[1], [0], [0], [1], [0, 0, 1, 1], [], []>} : vector<8x8xbf16>, vector<8x32xbf16>, vector<8x32xf32> -> vector<8x32xf32>
    %59 = arith.truncf %58 : vector<8x32xf32> to vector<8x32xbf16>
    %60 = vector.extract_strided_slice %12 {offsets = [32, 0], sizes = [32, 128], strides = [1, 1]} : vector<128x128xbf16> to vector<32x128xbf16>
    %cst_22 = arith.constant dense<0.000000e+00> : vector<8x128xf32>
    %61 = tpu.matmul %59, %60, %cst_22 {dimension_numbers = #tpu.dot_dimension_numbers<[1], [0], [0], [1], [0, 0, 1, 1], [], []>} : vector<8x32xbf16>, vector<32x128xbf16>, vector<8x128xf32> -> vector<8x128xf32>
    %62 = arith.addf %39, %61 : vector<8x128xf32>
    %63 = vector.extract_strided_slice %13 {offsets = [0, 64], sizes = [8, 32], strides = [1, 1]} : vector<8x128xbf16> to vector<8x32xbf16>
    %64 = vector.extract_strided_slice %14 {offsets = [0, 64], sizes = [8, 32], strides = [1, 1]} : vector<8x128xbf16> to vector<8x32xbf16>
    %cst_23 = arith.constant dense<0.000000e+00> : vector<8x8xf32>
    %65 = tpu.matmul %63, %64, %cst_23 {dimension_numbers = #tpu.dot_dimension_numbers<[1], [1], [0], [0], [0, 0, 1, 0], [], []>} : vector<8x32xbf16>, vector<8x32xbf16>, vector<8x8xf32> -> vector<8x8xf32>
    %cst_24 = arith.constant 0.176776692 : f32
    %66 = vector.broadcast %cst_24 : f32 to vector<8x8xf32>
    %67 = arith.mulf %65, %66 : vector<8x8xf32>
    %68 = arith.addf %67, %11 : vector<8x8xf32>
    %cst_25 = arith.constant dense<0xFF800000> : vector<8xf32>
    %69 = vector.multi_reduction <maximumf>, %68, %cst_25 [1] : vector<8x8xf32> to vector<8xf32>
    %70 = vector.shape_cast %69 : vector<8xf32> to vector<8x1xf32>
    %71 = vector.broadcast %70 : vector<8x1xf32> to vector<8x8xf32>
    %72 = arith.subf %68, %71 : vector<8x8xf32>
    %73 = math.exp %72 : vector<8x8xf32>
    %cst_26 = arith.constant dense<0.000000e+00> : vector<8xf32>
    %74 = vector.multi_reduction <add>, %73, %cst_26 [1] : vector<8x8xf32> to vector<8xf32>
    %75 = vector.shape_cast %74 : vector<8xf32> to vector<8x1xf32>
    %76 = tpu.reciprocal %75 {approx = true} : vector<8x1xf32> -> vector<8x1xf32>
    %77 = vector.broadcast %76 : vector<8x1xf32> to vector<8x8xf32>
    %78 = arith.mulf %73, %77 : vector<8x8xf32>
    %79 = arith.truncf %78 : vector<8x8xf32> to vector<8x8xbf16>
    %80 = vector.extract_strided_slice %15 {offsets = [0, 64], sizes = [8, 32], strides = [1, 1]} : vector<8x128xbf16> to vector<8x32xbf16>
    %cst_27 = arith.constant dense<0.000000e+00> : vector<8x32xf32>
    %81 = tpu.matmul %79, %80, %cst_27 {dimension_numbers = #tpu.dot_dimension_numbers<[1], [0], [0], [1], [0, 0, 1, 1], [], []>} : vector<8x8xbf16>, vector<8x32xbf16>, vector<8x32xf32> -> vector<8x32xf32>
    %82 = arith.truncf %81 : vector<8x32xf32> to vector<8x32xbf16>
    %83 = vector.extract_strided_slice %12 {offsets = [64, 0], sizes = [32, 128], strides = [1, 1]} : vector<128x128xbf16> to vector<32x128xbf16>
    %cst_28 = arith.constant dense<0.000000e+00> : vector<8x128xf32>
    %84 = tpu.matmul %82, %83, %cst_28 {dimension_numbers = #tpu.dot_dimension_numbers<[1], [0], [0], [1], [0, 0, 1, 1], [], []>} : vector<8x32xbf16>, vector<32x128xbf16>, vector<8x128xf32> -> vector<8x128xf32>
    %85 = arith.addf %62, %84 : vector<8x128xf32>
    %86 = vector.extract_strided_slice %13 {offsets = [0, 96], sizes = [8, 32], strides = [1, 1]} : vector<8x128xbf16> to vector<8x32xbf16>
    %87 = vector.extract_strided_slice %14 {offsets = [0, 96], sizes = [8, 32], strides = [1, 1]} : vector<8x128xbf16> to vector<8x32xbf16>
    %cst_29 = arith.constant dense<0.000000e+00> : vector<8x8xf32>
    %88 = tpu.matmul %86, %87, %cst_29 {dimension_numbers = #tpu.dot_dimension_numbers<[1], [1], [0], [0], [0, 0, 1, 0], [], []>} : vector<8x32xbf16>, vector<8x32xbf16>, vector<8x8xf32> -> vector<8x8xf32>
    %cst_30 = arith.constant 0.176776692 : f32
    %89 = vector.broadcast %cst_30 : f32 to vector<8x8xf32>
    %90 = arith.mulf %88, %89 : vector<8x8xf32>
    %91 = arith.addf %90, %11 : vector<8x8xf32>
    %cst_31 = arith.constant dense<0xFF800000> : vector<8xf32>
    %92 = vector.multi_reduction <maximumf>, %91, %cst_31 [1] : vector<8x8xf32> to vector<8xf32>
    %93 = vector.shape_cast %92 : vector<8xf32> to vector<8x1xf32>
    %94 = vector.broadcast %93 : vector<8x1xf32> to vector<8x8xf32>
    %95 = arith.subf %91, %94 : vector<8x8xf32>
    %96 = math.exp %95 : vector<8x8xf32>
    %cst_32 = arith.constant dense<0.000000e+00> : vector<8xf32>
    %97 = vector.multi_reduction <add>, %96, %cst_32 [1] : vector<8x8xf32> to vector<8xf32>
    %98 = vector.shape_cast %97 : vector<8xf32> to vector<8x1xf32>
    %99 = tpu.reciprocal %98 {approx = true} : vector<8x1xf32> -> vector<8x1xf32>
    %100 = vector.broadcast %99 : vector<8x1xf32> to vector<8x8xf32>
    %101 = arith.mulf %96, %100 : vector<8x8xf32>
    %102 = arith.truncf %101 : vector<8x8xf32> to vector<8x8xbf16>
    %103 = vector.extract_strided_slice %15 {offsets = [0, 96], sizes = [8, 32], strides = [1, 1]} : vector<8x128xbf16> to vector<8x32xbf16>
    %cst_33 = arith.constant dense<0.000000e+00> : vector<8x32xf32>
    %104 = tpu.matmul %102, %103, %cst_33 {dimension_numbers = #tpu.dot_dimension_numbers<[1], [0], [0], [1], [0, 0, 1, 1], [], []>} : vector<8x8xbf16>, vector<8x32xbf16>, vector<8x32xf32> -> vector<8x32xf32>
    %105 = arith.truncf %104 : vector<8x32xf32> to vector<8x32xbf16>
    %106 = vector.extract_strided_slice %12 {offsets = [96, 0], sizes = [32, 128], strides = [1, 1]} : vector<128x128xbf16> to vector<32x128xbf16>
    %cst_34 = arith.constant dense<0.000000e+00> : vector<8x128xf32>
    %107 = tpu.matmul %105, %106, %cst_34 {dimension_numbers = #tpu.dot_dimension_numbers<[1], [0], [0], [1], [0, 0, 1, 1], [], []>} : vector<8x32xbf16>, vector<32x128xbf16>, vector<8x128xf32> -> vector<8x128xf32>
    %108 = arith.addf %85, %107 : vector<8x128xf32>
    %109 = arith.addf %1, %108 : vector<8x128xf32>
    %c0_35 = arith.constant 0 : index
    %c0_36 = arith.constant 0 : index
    %110 = vector.load %arg6[%c0_35, %c0_36] : memref<1x128xf32, #tpu.memory_space<vmem>>, vector<1x128xf32>
    %111 = vector.broadcast %110 : vector<1x128xf32> to vector<8x128xf32>
    %112 = arith.addf %109, %111 : vector<8x128xf32>
    %c0_37 = arith.constant 0 : index
    %c0_38 = arith.constant 0 : index
    %113 = vector.load %arg7[%c0_37, %c0_38] : memref<1x128xf32, #tpu.memory_space<vmem>>, vector<1x128xf32>
    %c0_39 = arith.constant 0 : index
    %c0_40 = arith.constant 0 : index
    %114 = vector.load %arg8[%c0_39, %c0_40] : memref<1x128xf32, #tpu.memory_space<vmem>>, vector<1x128xf32>
    %cst_41 = arith.constant dense<0.000000e+00> : vector<8xf32>
    %115 = vector.multi_reduction <add>, %112, %cst_41 [1] : vector<8x128xf32> to vector<8xf32>
    %116 = vector.shape_cast %115 : vector<8xf32> to vector<8x1xf32>
    %cst_42 = arith.constant 1.280000e+02 : f32
    %117 = vector.broadcast %cst_42 : f32 to vector<8x1xf32>
    %118 = arith.divf %116, %117 : vector<8x1xf32>
    %119 = vector.broadcast %118 : vector<8x1xf32> to vector<8x128xf32>
    %120 = arith.subf %112, %119 : vector<8x128xf32>
    %121 = arith.mulf %120, %120 : vector<8x128xf32>
    %cst_43 = arith.constant dense<0.000000e+00> : vector<8xf32>
    %122 = vector.multi_reduction <add>, %121, %cst_43 [1] : vector<8x128xf32> to vector<8xf32>
    %123 = vector.shape_cast %122 : vector<8xf32> to vector<8x1xf32>
    %cst_44 = arith.constant 1.280000e+02 : f32
    %124 = vector.broadcast %cst_44 : f32 to vector<8x1xf32>
    %125 = arith.divf %123, %124 : vector<8x1xf32>
    %cst_45 = arith.constant 9.99999974E-6 : f32
    %126 = vector.broadcast %cst_45 : f32 to vector<8x1xf32>
    %127 = arith.addf %125, %126 : vector<8x1xf32>
    %128 = math.rsqrt %127 : vector<8x1xf32>
    %129 = vector.broadcast %128 : vector<8x1xf32> to vector<8x128xf32>
    %130 = arith.mulf %120, %129 : vector<8x128xf32>
    %131 = vector.broadcast %113 : vector<1x128xf32> to vector<8x128xf32>
    %132 = arith.mulf %130, %131 : vector<8x128xf32>
    %133 = vector.broadcast %114 : vector<1x128xf32> to vector<8x128xf32>
    %134 = arith.addf %132, %133 : vector<8x128xf32>
    %c0_46 = arith.constant 0 : index
    %c0_47 = arith.constant 0 : index
    %c0_48 = arith.constant 0 : index
    %135 = vector.load %arg9[%c0_46, %c0_47, %c0_48] : memref<1x8x128xf32, #tpu.memory_space<vmem>>, vector<1x8x128xf32>
    %136 = vector.shape_cast %135 : vector<1x8x128xf32> to vector<8x128xf32>
    %137 = vector.shape_cast %134 : vector<8x128xf32> to vector<1x8x128xf32>
    tpu.vector_store %arg9[%c0_46, %c0_47, %c0_48], %137 {strides = array<i32>} : memref<1x8x128xf32, #tpu.memory_space<vmem>>, vector<1x8x128xf32>,
    return
  }
  func.func @transform_0(%arg0: i32) -> (i32, i32, i32) {
    %c0_i32 = arith.constant 0 : i32
    %c0_i32_0 = arith.constant 0 : i32
    %c0_i32_1 = arith.constant 0 : i32
    return %arg0, %c0_i32, %c0_i32_0 : i32, i32, i32
  }
  func.func @transform_1(%arg0: i32) -> (i32, i32) {
    %c0_i32 = arith.constant 0 : i32
    %c0_i32_0 = arith.constant 0 : i32
    %c0_i32_1 = arith.constant 0 : i32
    return %c0_i32, %c0_i32_0 : i32, i32
  }
  func.func @transform_2(%arg0: i32) -> (i32, i32) {
    %c0_i32 = arith.constant 0 : i32
    %c0_i32_0 = arith.constant 0 : i32
    %c0_i32_1 = arith.constant 0 : i32
    return %c0_i32, %c0_i32_0 : i32, i32
  }
  func.func @transform_3(%arg0: i32) -> (i32, i32) {
    %c0_i32 = arith.constant 0 : i32
    %c0_i32_0 = arith.constant 0 : i32
    %c0_i32_1 = arith.constant 0 : i32
    return %c0_i32, %c0_i32_0 : i32, i32
  }
  func.func @transform_4(%arg0: i32) -> (i32, i32) {
    %c0_i32 = arith.constant 0 : i32
    %c0_i32_0 = arith.constant 0 : i32
    %c0_i32_1 = arith.constant 0 : i32
    return %c0_i32, %c0_i32_0 : i32, i32
  }
  func.func @transform_5(%arg0: i32) -> (i32, i32) {
    %c0_i32 = arith.constant 0 : i32
    %c0_i32_0 = arith.constant 0 : i32
    %c0_i32_1 = arith.constant 0 : i32
    return %c0_i32, %c0_i32_0 : i32, i32
  }
  func.func @transform_6(%arg0: i32) -> (i32, i32) {
    %c0_i32 = arith.constant 0 : i32
    %c0_i32_0 = arith.constant 0 : i32
    %c0_i32_1 = arith.constant 0 : i32
    return %c0_i32, %c0_i32_0 : i32, i32
  }
  func.func @transform_7(%arg0: i32) -> (i32, i32) {
    %c0_i32 = arith.constant 0 : i32
    %c0_i32_0 = arith.constant 0 : i32
    %c0_i32_1 = arith.constant 0 : i32
    return %c0_i32, %c0_i32_0 : i32, i32
  }
  func.func @transform_8(%arg0: i32) -> (i32, i32, i32) {
    %c0_i32 = arith.constant 0 : i32
    %c0_i32_0 = arith.constant 0 : i32
    %c0_i32_1 = arith.constant 0 : i32
    return %arg0, %c0_i32, %c0_i32_0 : i32, i32, i32
  }
}

module attributes {stable_mosaic.version = 11 : i64} {
  func.func @_cross_attn_block_kernel(%arg0: i32, %arg1: memref<1x8x128xf32, #tpu.memory_space<vmem>>, %arg2: memref<1x8x128xbf16, #tpu.memory_space<vmem>>, %arg3: memref<128x128xbf16, #tpu.memory_space<vmem>>, %arg4: memref<1x128xf32, #tpu.memory_space<vmem>>, %arg5: memref<128x256xbf16, #tpu.memory_space<vmem>>, %arg6: memref<1x256xf32, #tpu.memory_space<vmem>>, %arg7: memref<1x1x8xf32, #tpu.memory_space<vmem>>, %arg8: memref<128x128xbf16, #tpu.memory_space<vmem>>, %arg9: memref<1x128xf32, #tpu.memory_space<vmem>>, %arg10: memref<1x128xf32, #tpu.memory_space<vmem>>, %arg11: memref<1x128xf32, #tpu.memory_space<vmem>>, %arg12: memref<1x8x128xf32, #tpu.memory_space<vmem>>) attributes {dimension_semantics = [#tpu.dimension_semantics<parallel>], iteration_bounds = array<i64: 2>, scalar_prefetch = 0 : i64, scratch_operands = 0 : i64, tpu.core_type = #tpu.core_type<tc>, window_params = [{transform_indices = @transform_0, window_bounds = array<i64: 1, 8, 128>}, {transform_indices = @transform_1, window_bounds = array<i64: 1, 8, 128>}, {pipeline_mode = #tpu.pipeline_mode<synchronous>, transform_indices = @transform_2, window_bounds = array<i64: 128, 128>}, {pipeline_mode = #tpu.pipeline_mode<synchronous>, transform_indices = @transform_3, window_bounds = array<i64: 1, 128>}, {pipeline_mode = #tpu.pipeline_mode<synchronous>, transform_indices = @transform_4, window_bounds = array<i64: 128, 256>}, {pipeline_mode = #tpu.pipeline_mode<synchronous>, transform_indices = @transform_5, window_bounds = array<i64: 1, 256>}, {transform_indices = @transform_6, window_bounds = array<i64: 1, 1, 8>}, {pipeline_mode = #tpu.pipeline_mode<synchronous>, transform_indices = @transform_7, window_bounds = array<i64: 128, 128>}, {pipeline_mode = #tpu.pipeline_mode<synchronous>, transform_indices = @transform_8, window_bounds = array<i64: 1, 128>}, {pipeline_mode = #tpu.pipeline_mode<synchronous>, transform_indices = @transform_9, window_bounds = array<i64: 1, 128>}, {pipeline_mode = #tpu.pipeline_mode<synchronous>, transform_indices = @transform_10, window_bounds = array<i64: 1, 128>}, {transform_indices = @transform_11, window_bounds = array<i64: 1, 8, 128>}]} {
    %c0 = arith.constant 0 : index
    %c0_0 = arith.constant 0 : index
    %c0_1 = arith.constant 0 : index
    %0 = vector.load %arg1[%c0, %c0_0, %c0_1] : memref<1x8x128xf32, #tpu.memory_space<vmem>>, vector<1x8x128xf32>
    %1 = vector.shape_cast %0 : vector<1x8x128xf32> to vector<8x128xf32>
    %c0_2 = arith.constant 0 : index
    %c0_3 = arith.constant 0 : index
    %c0_4 = arith.constant 0 : index
    %2 = vector.load %arg2[%c0_2, %c0_3, %c0_4] : memref<1x8x128xbf16, #tpu.memory_space<vmem>>, vector<1x8x128xbf16>
    %3 = vector.shape_cast %2 : vector<1x8x128xbf16> to vector<8x128xbf16>
    %4 = arith.truncf %1 : vector<8x128xf32> to vector<8x128xbf16>
    %c0_5 = arith.constant 0 : index
    %c0_6 = arith.constant 0 : index
    %5 = vector.load %arg3[%c0_5, %c0_6] : memref<128x128xbf16, #tpu.memory_space<vmem>>, vector<128x128xbf16>
    %cst = arith.constant dense<0.000000e+00> : vector<8x128xf32>
    %6 = tpu.matmul %4, %5, %cst {dimension_numbers = #tpu.dot_dimension_numbers<[1], [0], [0], [1], [0, 0, 1, 1], [], []>} : vector<8x128xbf16>, vector<128x128xbf16>, vector<8x128xf32> -> vector<8x128xf32>
    %c0_7 = arith.constant 0 : index
    %c0_8 = arith.constant 0 : index
    %7 = vector.load %arg4[%c0_7, %c0_8] : memref<1x128xf32, #tpu.memory_space<vmem>>, vector<1x128xf32>
    %8 = vector.broadcast %7 : vector<1x128xf32> to vector<8x128xf32>
    %9 = arith.addf %6, %8 : vector<8x128xf32>
    %c0_9 = arith.constant 0 : index
    %c0_10 = arith.constant 0 : index
    %10 = vector.load %arg5[%c0_9, %c0_10] : memref<128x256xbf16, #tpu.memory_space<vmem>>, vector<128x256xbf16>
    %cst_11 = arith.constant dense<0.000000e+00> : vector<8x256xf32>
    %11 = tpu.matmul %3, %10, %cst_11 {dimension_numbers = #tpu.dot_dimension_numbers<[1], [0], [0], [1], [0, 0, 1, 1], [], []>} : vector<8x128xbf16>, vector<128x256xbf16>, vector<8x256xf32> -> vector<8x256xf32>
    %c0_12 = arith.constant 0 : index
    %c0_13 = arith.constant 0 : index
    %12 = vector.load %arg6[%c0_12, %c0_13] : memref<1x256xf32, #tpu.memory_space<vmem>>, vector<1x256xf32>
    %13 = vector.broadcast %12 : vector<1x256xf32> to vector<8x256xf32>
    %14 = arith.addf %11, %13 : vector<8x256xf32>
    %15 = vector.extract_strided_slice %14 {offsets = [0, 0], sizes = [8, 128], strides = [1, 1]} : vector<8x256xf32> to vector<8x128xf32>
    %16 = vector.extract_strided_slice %14 {offsets = [0, 128], sizes = [8, 128], strides = [1, 1]} : vector<8x256xf32> to vector<8x128xf32>
    %c0_14 = arith.constant 0 : index
    %c0_15 = arith.constant 0 : index
    %c0_16 = arith.constant 0 : index
    %17 = vector.load %arg7[%c0_14, %c0_15, %c0_16] : memref<1x1x8xf32, #tpu.memory_space<vmem>>, vector<1x1x8xf32>
    %18 = vector.shape_cast %17 : vector<1x1x8xf32> to vector<1x8xf32>
    %c0_17 = arith.constant 0 : index
    %c0_18 = arith.constant 0 : index
    %19 = vector.load %arg8[%c0_17, %c0_18] : memref<128x128xbf16, #tpu.memory_space<vmem>>, vector<128x128xbf16>
    %20 = arith.truncf %9 : vector<8x128xf32> to vector<8x128xbf16>
    %21 = arith.truncf %15 : vector<8x128xf32> to vector<8x128xbf16>
    %22 = arith.truncf %16 : vector<8x128xf32> to vector<8x128xbf16>
    %cst_19 = arith.constant 0.000000e+00 : f32
    %23 = vector.broadcast %cst_19 : f32 to vector<8x128xf32>
    %24 = vector.extract_strided_slice %20 {offsets = [0, 0], sizes = [8, 32], strides = [1, 1]} : vector<8x128xbf16> to vector<8x32xbf16>
    %25 = vector.extract_strided_slice %21 {offsets = [0, 0], sizes = [8, 32], strides = [1, 1]} : vector<8x128xbf16> to vector<8x32xbf16>
    %cst_20 = arith.constant dense<0.000000e+00> : vector<8x8xf32>
    %26 = tpu.matmul %24, %25, %cst_20 {dimension_numbers = #tpu.dot_dimension_numbers<[1], [1], [0], [0], [0, 0, 1, 0], [], []>} : vector<8x32xbf16>, vector<8x32xbf16>, vector<8x8xf32> -> vector<8x8xf32>
    %cst_21 = arith.constant 0.176776692 : f32
    %27 = vector.broadcast %cst_21 : f32 to vector<8x8xf32>
    %28 = arith.mulf %26, %27 : vector<8x8xf32>
    %29 = vector.broadcast %18 : vector<1x8xf32> to vector<8x8xf32>
    %30 = arith.addf %28, %29 : vector<8x8xf32>
    %cst_22 = arith.constant dense<0xFF800000> : vector<8xf32>
    %31 = vector.multi_reduction <maximumf>, %30, %cst_22 [1] : vector<8x8xf32> to vector<8xf32>
    %32 = vector.shape_cast %31 : vector<8xf32> to vector<8x1xf32>
    %33 = vector.broadcast %32 : vector<8x1xf32> to vector<8x8xf32>
    %34 = arith.subf %30, %33 : vector<8x8xf32>
    %35 = math.exp %34 : vector<8x8xf32>
    %cst_23 = arith.constant dense<0.000000e+00> : vector<8xf32>
    %36 = vector.multi_reduction <add>, %35, %cst_23 [1] : vector<8x8xf32> to vector<8xf32>
    %37 = vector.shape_cast %36 : vector<8xf32> to vector<8x1xf32>
    %38 = tpu.reciprocal %37 {approx = true} : vector<8x1xf32> -> vector<8x1xf32>
    %39 = vector.broadcast %38 : vector<8x1xf32> to vector<8x8xf32>
    %40 = arith.mulf %35, %39 : vector<8x8xf32>
    %41 = arith.truncf %40 : vector<8x8xf32> to vector<8x8xbf16>
    %42 = vector.extract_strided_slice %22 {offsets = [0, 0], sizes = [8, 32], strides = [1, 1]} : vector<8x128xbf16> to vector<8x32xbf16>
    %cst_24 = arith.constant dense<0.000000e+00> : vector<8x32xf32>
    %43 = tpu.matmul %41, %42, %cst_24 {dimension_numbers = #tpu.dot_dimension_numbers<[1], [0], [0], [1], [0, 0, 1, 1], [], []>} : vector<8x8xbf16>, vector<8x32xbf16>, vector<8x32xf32> -> vector<8x32xf32>
    %44 = arith.truncf %43 : vector<8x32xf32> to vector<8x32xbf16>
    %45 = vector.extract_strided_slice %19 {offsets = [0, 0], sizes = [32, 128], strides = [1, 1]} : vector<128x128xbf16> to vector<32x128xbf16>
    %cst_25 = arith.constant dense<0.000000e+00> : vector<8x128xf32>
    %46 = tpu.matmul %44, %45, %cst_25 {dimension_numbers = #tpu.dot_dimension_numbers<[1], [0], [0], [1], [0, 0, 1, 1], [], []>} : vector<8x32xbf16>, vector<32x128xbf16>, vector<8x128xf32> -> vector<8x128xf32>
    %47 = arith.addf %23, %46 : vector<8x128xf32>
    %48 = vector.extract_strided_slice %20 {offsets = [0, 32], sizes = [8, 32], strides = [1, 1]} : vector<8x128xbf16> to vector<8x32xbf16>
    %49 = vector.extract_strided_slice %21 {offsets = [0, 32], sizes = [8, 32], strides = [1, 1]} : vector<8x128xbf16> to vector<8x32xbf16>
    %cst_26 = arith.constant dense<0.000000e+00> : vector<8x8xf32>
    %50 = tpu.matmul %48, %49, %cst_26 {dimension_numbers = #tpu.dot_dimension_numbers<[1], [1], [0], [0], [0, 0, 1, 0], [], []>} : vector<8x32xbf16>, vector<8x32xbf16>, vector<8x8xf32> -> vector<8x8xf32>
    %cst_27 = arith.constant 0.176776692 : f32
    %51 = vector.broadcast %cst_27 : f32 to vector<8x8xf32>
    %52 = arith.mulf %50, %51 : vector<8x8xf32>
    %53 = vector.broadcast %18 : vector<1x8xf32> to vector<8x8xf32>
    %54 = arith.addf %52, %53 : vector<8x8xf32>
    %cst_28 = arith.constant dense<0xFF800000> : vector<8xf32>
    %55 = vector.multi_reduction <maximumf>, %54, %cst_28 [1] : vector<8x8xf32> to vector<8xf32>
    %56 = vector.shape_cast %55 : vector<8xf32> to vector<8x1xf32>
    %57 = vector.broadcast %56 : vector<8x1xf32> to vector<8x8xf32>
    %58 = arith.subf %54, %57 : vector<8x8xf32>
    %59 = math.exp %58 : vector<8x8xf32>
    %cst_29 = arith.constant dense<0.000000e+00> : vector<8xf32>
    %60 = vector.multi_reduction <add>, %59, %cst_29 [1] : vector<8x8xf32> to vector<8xf32>
    %61 = vector.shape_cast %60 : vector<8xf32> to vector<8x1xf32>
    %62 = tpu.reciprocal %61 {approx = true} : vector<8x1xf32> -> vector<8x1xf32>
    %63 = vector.broadcast %62 : vector<8x1xf32> to vector<8x8xf32>
    %64 = arith.mulf %59, %63 : vector<8x8xf32>
    %65 = arith.truncf %64 : vector<8x8xf32> to vector<8x8xbf16>
    %66 = vector.extract_strided_slice %22 {offsets = [0, 32], sizes = [8, 32], strides = [1, 1]} : vector<8x128xbf16> to vector<8x32xbf16>
    %cst_30 = arith.constant dense<0.000000e+00> : vector<8x32xf32>
    %67 = tpu.matmul %65, %66, %cst_30 {dimension_numbers = #tpu.dot_dimension_numbers<[1], [0], [0], [1], [0, 0, 1, 1], [], []>} : vector<8x8xbf16>, vector<8x32xbf16>, vector<8x32xf32> -> vector<8x32xf32>
    %68 = arith.truncf %67 : vector<8x32xf32> to vector<8x32xbf16>
    %69 = vector.extract_strided_slice %19 {offsets = [32, 0], sizes = [32, 128], strides = [1, 1]} : vector<128x128xbf16> to vector<32x128xbf16>
    %cst_31 = arith.constant dense<0.000000e+00> : vector<8x128xf32>
    %70 = tpu.matmul %68, %69, %cst_31 {dimension_numbers = #tpu.dot_dimension_numbers<[1], [0], [0], [1], [0, 0, 1, 1], [], []>} : vector<8x32xbf16>, vector<32x128xbf16>, vector<8x128xf32> -> vector<8x128xf32>
    %71 = arith.addf %47, %70 : vector<8x128xf32>
    %72 = vector.extract_strided_slice %20 {offsets = [0, 64], sizes = [8, 32], strides = [1, 1]} : vector<8x128xbf16> to vector<8x32xbf16>
    %73 = vector.extract_strided_slice %21 {offsets = [0, 64], sizes = [8, 32], strides = [1, 1]} : vector<8x128xbf16> to vector<8x32xbf16>
    %cst_32 = arith.constant dense<0.000000e+00> : vector<8x8xf32>
    %74 = tpu.matmul %72, %73, %cst_32 {dimension_numbers = #tpu.dot_dimension_numbers<[1], [1], [0], [0], [0, 0, 1, 0], [], []>} : vector<8x32xbf16>, vector<8x32xbf16>, vector<8x8xf32> -> vector<8x8xf32>
    %cst_33 = arith.constant 0.176776692 : f32
    %75 = vector.broadcast %cst_33 : f32 to vector<8x8xf32>
    %76 = arith.mulf %74, %75 : vector<8x8xf32>
    %77 = vector.broadcast %18 : vector<1x8xf32> to vector<8x8xf32>
    %78 = arith.addf %76, %77 : vector<8x8xf32>
    %cst_34 = arith.constant dense<0xFF800000> : vector<8xf32>
    %79 = vector.multi_reduction <maximumf>, %78, %cst_34 [1] : vector<8x8xf32> to vector<8xf32>
    %80 = vector.shape_cast %79 : vector<8xf32> to vector<8x1xf32>
    %81 = vector.broadcast %80 : vector<8x1xf32> to vector<8x8xf32>
    %82 = arith.subf %78, %81 : vector<8x8xf32>
    %83 = math.exp %82 : vector<8x8xf32>
    %cst_35 = arith.constant dense<0.000000e+00> : vector<8xf32>
    %84 = vector.multi_reduction <add>, %83, %cst_35 [1] : vector<8x8xf32> to vector<8xf32>
    %85 = vector.shape_cast %84 : vector<8xf32> to vector<8x1xf32>
    %86 = tpu.reciprocal %85 {approx = true} : vector<8x1xf32> -> vector<8x1xf32>
    %87 = vector.broadcast %86 : vector<8x1xf32> to vector<8x8xf32>
    %88 = arith.mulf %83, %87 : vector<8x8xf32>
    %89 = arith.truncf %88 : vector<8x8xf32> to vector<8x8xbf16>
    %90 = vector.extract_strided_slice %22 {offsets = [0, 64], sizes = [8, 32], strides = [1, 1]} : vector<8x128xbf16> to vector<8x32xbf16>
    %cst_36 = arith.constant dense<0.000000e+00> : vector<8x32xf32>
    %91 = tpu.matmul %89, %90, %cst_36 {dimension_numbers = #tpu.dot_dimension_numbers<[1], [0], [0], [1], [0, 0, 1, 1], [], []>} : vector<8x8xbf16>, vector<8x32xbf16>, vector<8x32xf32> -> vector<8x32xf32>
    %92 = arith.truncf %91 : vector<8x32xf32> to vector<8x32xbf16>
    %93 = vector.extract_strided_slice %19 {offsets = [64, 0], sizes = [32, 128], strides = [1, 1]} : vector<128x128xbf16> to vector<32x128xbf16>
    %cst_37 = arith.constant dense<0.000000e+00> : vector<8x128xf32>
    %94 = tpu.matmul %92, %93, %cst_37 {dimension_numbers = #tpu.dot_dimension_numbers<[1], [0], [0], [1], [0, 0, 1, 1], [], []>} : vector<8x32xbf16>, vector<32x128xbf16>, vector<8x128xf32> -> vector<8x128xf32>
    %95 = arith.addf %71, %94 : vector<8x128xf32>
    %96 = vector.extract_strided_slice %20 {offsets = [0, 96], sizes = [8, 32], strides = [1, 1]} : vector<8x128xbf16> to vector<8x32xbf16>
    %97 = vector.extract_strided_slice %21 {offsets = [0, 96], sizes = [8, 32], strides = [1, 1]} : vector<8x128xbf16> to vector<8x32xbf16>
    %cst_38 = arith.constant dense<0.000000e+00> : vector<8x8xf32>
    %98 = tpu.matmul %96, %97, %cst_38 {dimension_numbers = #tpu.dot_dimension_numbers<[1], [1], [0], [0], [0, 0, 1, 0], [], []>} : vector<8x32xbf16>, vector<8x32xbf16>, vector<8x8xf32> -> vector<8x8xf32>
    %cst_39 = arith.constant 0.176776692 : f32
    %99 = vector.broadcast %cst_39 : f32 to vector<8x8xf32>
    %100 = arith.mulf %98, %99 : vector<8x8xf32>
    %101 = vector.broadcast %18 : vector<1x8xf32> to vector<8x8xf32>
    %102 = arith.addf %100, %101 : vector<8x8xf32>
    %cst_40 = arith.constant dense<0xFF800000> : vector<8xf32>
    %103 = vector.multi_reduction <maximumf>, %102, %cst_40 [1] : vector<8x8xf32> to vector<8xf32>
    %104 = vector.shape_cast %103 : vector<8xf32> to vector<8x1xf32>
    %105 = vector.broadcast %104 : vector<8x1xf32> to vector<8x8xf32>
    %106 = arith.subf %102, %105 : vector<8x8xf32>
    %107 = math.exp %106 : vector<8x8xf32>
    %cst_41 = arith.constant dense<0.000000e+00> : vector<8xf32>
    %108 = vector.multi_reduction <add>, %107, %cst_41 [1] : vector<8x8xf32> to vector<8xf32>
    %109 = vector.shape_cast %108 : vector<8xf32> to vector<8x1xf32>
    %110 = tpu.reciprocal %109 {approx = true} : vector<8x1xf32> -> vector<8x1xf32>
    %111 = vector.broadcast %110 : vector<8x1xf32> to vector<8x8xf32>
    %112 = arith.mulf %107, %111 : vector<8x8xf32>
    %113 = arith.truncf %112 : vector<8x8xf32> to vector<8x8xbf16>
    %114 = vector.extract_strided_slice %22 {offsets = [0, 96], sizes = [8, 32], strides = [1, 1]} : vector<8x128xbf16> to vector<8x32xbf16>
    %cst_42 = arith.constant dense<0.000000e+00> : vector<8x32xf32>
    %115 = tpu.matmul %113, %114, %cst_42 {dimension_numbers = #tpu.dot_dimension_numbers<[1], [0], [0], [1], [0, 0, 1, 1], [], []>} : vector<8x8xbf16>, vector<8x32xbf16>, vector<8x32xf32> -> vector<8x32xf32>
    %116 = arith.truncf %115 : vector<8x32xf32> to vector<8x32xbf16>
    %117 = vector.extract_strided_slice %19 {offsets = [96, 0], sizes = [32, 128], strides = [1, 1]} : vector<128x128xbf16> to vector<32x128xbf16>
    %cst_43 = arith.constant dense<0.000000e+00> : vector<8x128xf32>
    %118 = tpu.matmul %116, %117, %cst_43 {dimension_numbers = #tpu.dot_dimension_numbers<[1], [0], [0], [1], [0, 0, 1, 1], [], []>} : vector<8x32xbf16>, vector<32x128xbf16>, vector<8x128xf32> -> vector<8x128xf32>
    %119 = arith.addf %95, %118 : vector<8x128xf32>
    %120 = arith.addf %1, %119 : vector<8x128xf32>
    %c0_44 = arith.constant 0 : index
    %c0_45 = arith.constant 0 : index
    %121 = vector.load %arg9[%c0_44, %c0_45] : memref<1x128xf32, #tpu.memory_space<vmem>>, vector<1x128xf32>
    %122 = vector.broadcast %121 : vector<1x128xf32> to vector<8x128xf32>
    %123 = arith.addf %120, %122 : vector<8x128xf32>
    %c0_46 = arith.constant 0 : index
    %c0_47 = arith.constant 0 : index
    %124 = vector.load %arg10[%c0_46, %c0_47] : memref<1x128xf32, #tpu.memory_space<vmem>>, vector<1x128xf32>
    %c0_48 = arith.constant 0 : index
    %c0_49 = arith.constant 0 : index
    %125 = vector.load %arg11[%c0_48, %c0_49] : memref<1x128xf32, #tpu.memory_space<vmem>>, vector<1x128xf32>
    %cst_50 = arith.constant dense<0.000000e+00> : vector<8xf32>
    %126 = vector.multi_reduction <add>, %123, %cst_50 [1] : vector<8x128xf32> to vector<8xf32>
    %127 = vector.shape_cast %126 : vector<8xf32> to vector<8x1xf32>
    %cst_51 = arith.constant 1.280000e+02 : f32
    %128 = vector.broadcast %cst_51 : f32 to vector<8x1xf32>
    %129 = arith.divf %127, %128 : vector<8x1xf32>
    %130 = vector.broadcast %129 : vector<8x1xf32> to vector<8x128xf32>
    %131 = arith.subf %123, %130 : vector<8x128xf32>
    %132 = arith.mulf %131, %131 : vector<8x128xf32>
    %cst_52 = arith.constant dense<0.000000e+00> : vector<8xf32>
    %133 = vector.multi_reduction <add>, %132, %cst_52 [1] : vector<8x128xf32> to vector<8xf32>
    %134 = vector.shape_cast %133 : vector<8xf32> to vector<8x1xf32>
    %cst_53 = arith.constant 1.280000e+02 : f32
    %135 = vector.broadcast %cst_53 : f32 to vector<8x1xf32>
    %136 = arith.divf %134, %135 : vector<8x1xf32>
    %cst_54 = arith.constant 9.99999974E-6 : f32
    %137 = vector.broadcast %cst_54 : f32 to vector<8x1xf32>
    %138 = arith.addf %136, %137 : vector<8x1xf32>
    %139 = math.rsqrt %138 : vector<8x1xf32>
    %140 = vector.broadcast %139 : vector<8x1xf32> to vector<8x128xf32>
    %141 = arith.mulf %131, %140 : vector<8x128xf32>
    %142 = vector.broadcast %124 : vector<1x128xf32> to vector<8x128xf32>
    %143 = arith.mulf %141, %142 : vector<8x128xf32>
    %144 = vector.broadcast %125 : vector<1x128xf32> to vector<8x128xf32>
    %145 = arith.addf %143, %144 : vector<8x128xf32>
    %c0_55 = arith.constant 0 : index
    %c0_56 = arith.constant 0 : index
    %c0_57 = arith.constant 0 : index
    %146 = vector.load %arg12[%c0_55, %c0_56, %c0_57] : memref<1x8x128xf32, #tpu.memory_space<vmem>>, vector<1x8x128xf32>
    %147 = vector.shape_cast %146 : vector<1x8x128xf32> to vector<8x128xf32>
    %148 = vector.shape_cast %145 : vector<8x128xf32> to vector<1x8x128xf32>
    tpu.vector_store %arg12[%c0_55, %c0_56, %c0_57], %148 {strides = array<i32>} : memref<1x8x128xf32, #tpu.memory_space<vmem>>, vector<1x8x128xf32>,
    return
  }
  func.func @transform_0(%arg0: i32) -> (i32, i32, i32) {
    %c0_i32 = arith.constant 0 : i32
    %c0_i32_0 = arith.constant 0 : i32
    %c0_i32_1 = arith.constant 0 : i32
    return %arg0, %c0_i32, %c0_i32_0 : i32, i32, i32
  }
  func.func @transform_1(%arg0: i32) -> (i32, i32, i32) {
    %c0_i32 = arith.constant 0 : i32
    %c0_i32_0 = arith.constant 0 : i32
    %c0_i32_1 = arith.constant 0 : i32
    return %arg0, %c0_i32, %c0_i32_0 : i32, i32, i32
  }
  func.func @transform_2(%arg0: i32) -> (i32, i32) {
    %c0_i32 = arith.constant 0 : i32
    %c0_i32_0 = arith.constant 0 : i32
    %c0_i32_1 = arith.constant 0 : i32
    return %c0_i32, %c0_i32_0 : i32, i32
  }
  func.func @transform_3(%arg0: i32) -> (i32, i32) {
    %c0_i32 = arith.constant 0 : i32
    %c0_i32_0 = arith.constant 0 : i32
    %c0_i32_1 = arith.constant 0 : i32
    return %c0_i32, %c0_i32_0 : i32, i32
  }
  func.func @transform_4(%arg0: i32) -> (i32, i32) {
    %c0_i32 = arith.constant 0 : i32
    %c0_i32_0 = arith.constant 0 : i32
    %c0_i32_1 = arith.constant 0 : i32
    return %c0_i32, %c0_i32_0 : i32, i32
  }
  func.func @transform_5(%arg0: i32) -> (i32, i32) {
    %c0_i32 = arith.constant 0 : i32
    %c0_i32_0 = arith.constant 0 : i32
    %c0_i32_1 = arith.constant 0 : i32
    return %c0_i32, %c0_i32_0 : i32, i32
  }
  func.func @transform_6(%arg0: i32) -> (i32, i32, i32) {
    %c0_i32 = arith.constant 0 : i32
    %c0_i32_0 = arith.constant 0 : i32
    %c0_i32_1 = arith.constant 0 : i32
    return %arg0, %c0_i32, %c0_i32_0 : i32, i32, i32
  }
  func.func @transform_7(%arg0: i32) -> (i32, i32) {
    %c0_i32 = arith.constant 0 : i32
    %c0_i32_0 = arith.constant 0 : i32
    %c0_i32_1 = arith.constant 0 : i32
    return %c0_i32, %c0_i32_0 : i32, i32
  }
  func.func @transform_8(%arg0: i32) -> (i32, i32) {
    %c0_i32 = arith.constant 0 : i32
    %c0_i32_0 = arith.constant 0 : i32
    %c0_i32_1 = arith.constant 0 : i32
    return %c0_i32, %c0_i32_0 : i32, i32
  }
  func.func @transform_9(%arg0: i32) -> (i32, i32) {
    %c0_i32 = arith.constant 0 : i32
    %c0_i32_0 = arith.constant 0 : i32
    %c0_i32_1 = arith.constant 0 : i32
    return %c0_i32, %c0_i32_0 : i32, i32
  }
  func.func @transform_10(%arg0: i32) -> (i32, i32) {
    %c0_i32 = arith.constant 0 : i32
    %c0_i32_0 = arith.constant 0 : i32
    %c0_i32_1 = arith.constant 0 : i32
    return %c0_i32, %c0_i32_0 : i32, i32
  }
  func.func @transform_11(%arg0: i32) -> (i32, i32, i32) {
    %c0_i32 = arith.constant 0 : i32
    %c0_i32_0 = arith.constant 0 : i32
    %c0_i32_1 = arith.constant 0 : i32
    return %arg0, %c0_i32, %c0_i32_0 : i32, i32, i32
  }
}

module attributes {stable_mosaic.version = 11 : i64} {
  func.func @_ffn_block_kernel(%arg0: i32, %arg1: memref<16x128xf32, #tpu.memory_space<vmem>>, %arg2: memref<128x256xbf16, #tpu.memory_space<vmem>>, %arg3: memref<1x256xf32, #tpu.memory_space<vmem>>, %arg4: memref<256x128xbf16, #tpu.memory_space<vmem>>, %arg5: memref<1x128xf32, #tpu.memory_space<vmem>>, %arg6: memref<1x128xf32, #tpu.memory_space<vmem>>, %arg7: memref<1x128xf32, #tpu.memory_space<vmem>>, %arg8: memref<16x128xf32, #tpu.memory_space<vmem>>) attributes {dimension_semantics = [#tpu.dimension_semantics<parallel>], iteration_bounds = array<i64: 1>, scalar_prefetch = 0 : i64, scratch_operands = 0 : i64, tpu.core_type = #tpu.core_type<tc>, window_params = [{transform_indices = @transform_0, window_bounds = array<i64: 16, 128>}, {pipeline_mode = #tpu.pipeline_mode<synchronous>, transform_indices = @transform_1, window_bounds = array<i64: 128, 256>}, {pipeline_mode = #tpu.pipeline_mode<synchronous>, transform_indices = @transform_2, window_bounds = array<i64: 1, 256>}, {pipeline_mode = #tpu.pipeline_mode<synchronous>, transform_indices = @transform_3, window_bounds = array<i64: 256, 128>}, {pipeline_mode = #tpu.pipeline_mode<synchronous>, transform_indices = @transform_4, window_bounds = array<i64: 1, 128>}, {pipeline_mode = #tpu.pipeline_mode<synchronous>, transform_indices = @transform_5, window_bounds = array<i64: 1, 128>}, {pipeline_mode = #tpu.pipeline_mode<synchronous>, transform_indices = @transform_6, window_bounds = array<i64: 1, 128>}, {transform_indices = @transform_7, window_bounds = array<i64: 16, 128>}]} {
    %c0 = arith.constant 0 : index
    %c0_0 = arith.constant 0 : index
    %0 = vector.load %arg1[%c0, %c0_0] : memref<16x128xf32, #tpu.memory_space<vmem>>, vector<16x128xf32>
    %1 = arith.truncf %0 : vector<16x128xf32> to vector<16x128xbf16>
    %c0_1 = arith.constant 0 : index
    %c0_2 = arith.constant 0 : index
    %2 = vector.load %arg2[%c0_1, %c0_2] : memref<128x256xbf16, #tpu.memory_space<vmem>>, vector<128x256xbf16>
    %cst = arith.constant dense<0.000000e+00> : vector<16x256xf32>
    %3 = tpu.matmul %1, %2, %cst {dimension_numbers = #tpu.dot_dimension_numbers<[1], [0], [0], [1], [0, 0, 1, 1], [], []>} : vector<16x128xbf16>, vector<128x256xbf16>, vector<16x256xf32> -> vector<16x256xf32>
    %c0_3 = arith.constant 0 : index
    %c0_4 = arith.constant 0 : index
    %4 = vector.load %arg3[%c0_3, %c0_4] : memref<1x256xf32, #tpu.memory_space<vmem>>, vector<1x256xf32>
    %5 = vector.broadcast %4 : vector<1x256xf32> to vector<16x256xf32>
    %6 = arith.addf %3, %5 : vector<16x256xf32>
    %cst_5 = arith.constant 5.000000e-01 : f32
    %7 = vector.broadcast %cst_5 : f32 to vector<16x256xf32>
    %8 = arith.mulf %7, %6 : vector<16x256xf32>
    %cst_6 = arith.constant 4.471500e-02 : f32
    %9 = vector.broadcast %cst_6 : f32 to vector<16x256xf32>
    %10 = arith.mulf %9, %6 : vector<16x256xf32>
    %11 = arith.mulf %10, %6 : vector<16x256xf32>
    %12 = arith.mulf %11, %6 : vector<16x256xf32>
    %13 = arith.addf %6, %12 : vector<16x256xf32>
    %cst_7 = arith.constant 0.797884583 : f32
    %14 = vector.broadcast %cst_7 : f32 to vector<16x256xf32>
    %15 = arith.mulf %14, %13 : vector<16x256xf32>
    %16 = math.tanh %15 : vector<16x256xf32>
    %cst_8 = arith.constant 1.000000e+00 : f32
    %17 = vector.broadcast %cst_8 : f32 to vector<16x256xf32>
    %18 = arith.addf %17, %16 : vector<16x256xf32>
    %19 = arith.mulf %8, %18 : vector<16x256xf32>
    %20 = arith.truncf %19 : vector<16x256xf32> to vector<16x256xbf16>
    %c0_9 = arith.constant 0 : index
    %c0_10 = arith.constant 0 : index
    %21 = vector.load %arg4[%c0_9, %c0_10] : memref<256x128xbf16, #tpu.memory_space<vmem>>, vector<256x128xbf16>
    %cst_11 = arith.constant dense<0.000000e+00> : vector<16x128xf32>
    %22 = tpu.matmul %20, %21, %cst_11 {dimension_numbers = #tpu.dot_dimension_numbers<[1], [0], [0], [1], [0, 0, 1, 1], [], []>} : vector<16x256xbf16>, vector<256x128xbf16>, vector<16x128xf32> -> vector<16x128xf32>
    %c0_12 = arith.constant 0 : index
    %c0_13 = arith.constant 0 : index
    %23 = vector.load %arg5[%c0_12, %c0_13] : memref<1x128xf32, #tpu.memory_space<vmem>>, vector<1x128xf32>
    %24 = vector.broadcast %23 : vector<1x128xf32> to vector<16x128xf32>
    %25 = arith.addf %22, %24 : vector<16x128xf32>
    %26 = arith.addf %0, %25 : vector<16x128xf32>
    %c0_14 = arith.constant 0 : index
    %c0_15 = arith.constant 0 : index
    %27 = vector.load %arg6[%c0_14, %c0_15] : memref<1x128xf32, #tpu.memory_space<vmem>>, vector<1x128xf32>
    %c0_16 = arith.constant 0 : index
    %c0_17 = arith.constant 0 : index
    %28 = vector.load %arg7[%c0_16, %c0_17] : memref<1x128xf32, #tpu.memory_space<vmem>>, vector<1x128xf32>
    %cst_18 = arith.constant dense<0.000000e+00> : vector<16xf32>
    %29 = vector.multi_reduction <add>, %26, %cst_18 [1] : vector<16x128xf32> to vector<16xf32>
    %30 = vector.shape_cast %29 : vector<16xf32> to vector<16x1xf32>
    %cst_19 = arith.constant 1.280000e+02 : f32
    %31 = vector.broadcast %cst_19 : f32 to vector<16x1xf32>
    %32 = arith.divf %30, %31 : vector<16x1xf32>
    %33 = vector.broadcast %32 : vector<16x1xf32> to vector<16x128xf32>
    %34 = arith.subf %26, %33 : vector<16x128xf32>
    %35 = arith.mulf %34, %34 : vector<16x128xf32>
    %cst_20 = arith.constant dense<0.000000e+00> : vector<16xf32>
    %36 = vector.multi_reduction <add>, %35, %cst_20 [1] : vector<16x128xf32> to vector<16xf32>
    %37 = vector.shape_cast %36 : vector<16xf32> to vector<16x1xf32>
    %cst_21 = arith.constant 1.280000e+02 : f32
    %38 = vector.broadcast %cst_21 : f32 to vector<16x1xf32>
    %39 = arith.divf %37, %38 : vector<16x1xf32>
    %cst_22 = arith.constant 9.99999974E-6 : f32
    %40 = vector.broadcast %cst_22 : f32 to vector<16x1xf32>
    %41 = arith.addf %39, %40 : vector<16x1xf32>
    %42 = math.rsqrt %41 : vector<16x1xf32>
    %43 = vector.broadcast %42 : vector<16x1xf32> to vector<16x128xf32>
    %44 = arith.mulf %34, %43 : vector<16x128xf32>
    %45 = vector.broadcast %27 : vector<1x128xf32> to vector<16x128xf32>
    %46 = arith.mulf %44, %45 : vector<16x128xf32>
    %47 = vector.broadcast %28 : vector<1x128xf32> to vector<16x128xf32>
    %48 = arith.addf %46, %47 : vector<16x128xf32>
    %c0_23 = arith.constant 0 : index
    %c0_24 = arith.constant 0 : index
    %49 = vector.load %arg8[%c0_23, %c0_24] : memref<16x128xf32, #tpu.memory_space<vmem>>, vector<16x128xf32>
    tpu.vector_store %arg8[%c0_23, %c0_24], %48 {strides = array<i32>} : memref<16x128xf32, #tpu.memory_space<vmem>>, vector<16x128xf32>,
    return
  }
  func.func @transform_0(%arg0: i32) -> (i32, i32) {
    %c0_i32 = arith.constant 0 : i32
    %c0_i32_0 = arith.constant 0 : i32
    return %arg0, %c0_i32 : i32, i32
  }
  func.func @transform_1(%arg0: i32) -> (i32, i32) {
    %c0_i32 = arith.constant 0 : i32
    %c0_i32_0 = arith.constant 0 : i32
    %c0_i32_1 = arith.constant 0 : i32
    return %c0_i32, %c0_i32_0 : i32, i32
  }
  func.func @transform_2(%arg0: i32) -> (i32, i32) {
    %c0_i32 = arith.constant 0 : i32
    %c0_i32_0 = arith.constant 0 : i32
    %c0_i32_1 = arith.constant 0 : i32
    return %c0_i32, %c0_i32_0 : i32, i32
  }
  func.func @transform_3(%arg0: i32) -> (i32, i32) {
    %c0_i32 = arith.constant 0 : i32
    %c0_i32_0 = arith.constant 0 : i32
    %c0_i32_1 = arith.constant 0 : i32
    return %c0_i32, %c0_i32_0 : i32, i32
  }
  func.func @transform_4(%arg0: i32) -> (i32, i32) {
    %c0_i32 = arith.constant 0 : i32
    %c0_i32_0 = arith.constant 0 : i32
    %c0_i32_1 = arith.constant 0 : i32
    return %c0_i32, %c0_i32_0 : i32, i32
  }
  func.func @transform_5(%arg0: i32) -> (i32, i32) {
    %c0_i32 = arith.constant 0 : i32
    %c0_i32_0 = arith.constant 0 : i32
    %c0_i32_1 = arith.constant 0 : i32
    return %c0_i32, %c0_i32_0 : i32, i32
  }
  func.func @transform_6(%arg0: i32) -> (i32, i32) {
    %c0_i32 = arith.constant 0 : i32
    %c0_i32_0 = arith.constant 0 : i32
    %c0_i32_1 = arith.constant 0 : i32
    return %c0_i32, %c0_i32_0 : i32, i32
  }
  func.func @transform_7(%arg0: i32) -> (i32, i32) {
    %c0_i32 = arith.constant 0 : i32
    %c0_i32_0 = arith.constant 0 : i32
    return %arg0, %c0_i32 : i32, i32
  }
}

module attributes {stable_mosaic.version = 11 : i64} {
  func.func @_ffn_block_kernel(%arg0: i32, %arg1: memref<16x128xf32, #tpu.memory_space<vmem>>, %arg2: memref<128x256xbf16, #tpu.memory_space<vmem>>, %arg3: memref<1x256xf32, #tpu.memory_space<vmem>>, %arg4: memref<256x128xbf16, #tpu.memory_space<vmem>>, %arg5: memref<1x128xf32, #tpu.memory_space<vmem>>, %arg6: memref<1x128xf32, #tpu.memory_space<vmem>>, %arg7: memref<1x128xf32, #tpu.memory_space<vmem>>, %arg8: memref<16x128xf32, #tpu.memory_space<vmem>>) attributes {dimension_semantics = [#tpu.dimension_semantics<parallel>], iteration_bounds = array<i64: 1>, scalar_prefetch = 0 : i64, scratch_operands = 0 : i64, tpu.core_type = #tpu.core_type<tc>, window_params = [{transform_indices = @transform_0, window_bounds = array<i64: 16, 128>}, {pipeline_mode = #tpu.pipeline_mode<synchronous>, transform_indices = @transform_1, window_bounds = array<i64: 128, 256>}, {pipeline_mode = #tpu.pipeline_mode<synchronous>, transform_indices = @transform_2, window_bounds = array<i64: 1, 256>}, {pipeline_mode = #tpu.pipeline_mode<synchronous>, transform_indices = @transform_3, window_bounds = array<i64: 256, 128>}, {pipeline_mode = #tpu.pipeline_mode<synchronous>, transform_indices = @transform_4, window_bounds = array<i64: 1, 128>}, {pipeline_mode = #tpu.pipeline_mode<synchronous>, transform_indices = @transform_5, window_bounds = array<i64: 1, 128>}, {pipeline_mode = #tpu.pipeline_mode<synchronous>, transform_indices = @transform_6, window_bounds = array<i64: 1, 128>}, {transform_indices = @transform_7, window_bounds = array<i64: 16, 128>}]} {
    %c0 = arith.constant 0 : index
    %c0_0 = arith.constant 0 : index
    %0 = vector.load %arg1[%c0, %c0_0] : memref<16x128xf32, #tpu.memory_space<vmem>>, vector<16x128xf32>
    %1 = arith.truncf %0 : vector<16x128xf32> to vector<16x128xbf16>
    %c0_1 = arith.constant 0 : index
    %c0_2 = arith.constant 0 : index
    %2 = vector.load %arg2[%c0_1, %c0_2] : memref<128x256xbf16, #tpu.memory_space<vmem>>, vector<128x256xbf16>
    %cst = arith.constant dense<0.000000e+00> : vector<16x256xf32>
    %3 = tpu.matmul %1, %2, %cst {dimension_numbers = #tpu.dot_dimension_numbers<[1], [0], [0], [1], [0, 0, 1, 1], [], []>} : vector<16x128xbf16>, vector<128x256xbf16>, vector<16x256xf32> -> vector<16x256xf32>
    %c0_3 = arith.constant 0 : index
    %c0_4 = arith.constant 0 : index
    %4 = vector.load %arg3[%c0_3, %c0_4] : memref<1x256xf32, #tpu.memory_space<vmem>>, vector<1x256xf32>
    %5 = vector.broadcast %4 : vector<1x256xf32> to vector<16x256xf32>
    %6 = arith.addf %3, %5 : vector<16x256xf32>
    %cst_5 = arith.constant 5.000000e-01 : f32
    %7 = vector.broadcast %cst_5 : f32 to vector<16x256xf32>
    %8 = arith.mulf %7, %6 : vector<16x256xf32>
    %cst_6 = arith.constant 4.471500e-02 : f32
    %9 = vector.broadcast %cst_6 : f32 to vector<16x256xf32>
    %10 = arith.mulf %9, %6 : vector<16x256xf32>
    %11 = arith.mulf %10, %6 : vector<16x256xf32>
    %12 = arith.mulf %11, %6 : vector<16x256xf32>
    %13 = arith.addf %6, %12 : vector<16x256xf32>
    %cst_7 = arith.constant 0.797884583 : f32
    %14 = vector.broadcast %cst_7 : f32 to vector<16x256xf32>
    %15 = arith.mulf %14, %13 : vector<16x256xf32>
    %16 = math.tanh %15 : vector<16x256xf32>
    %cst_8 = arith.constant 1.000000e+00 : f32
    %17 = vector.broadcast %cst_8 : f32 to vector<16x256xf32>
    %18 = arith.addf %17, %16 : vector<16x256xf32>
    %19 = arith.mulf %8, %18 : vector<16x256xf32>
    %20 = arith.truncf %19 : vector<16x256xf32> to vector<16x256xbf16>
    %c0_9 = arith.constant 0 : index
    %c0_10 = arith.constant 0 : index
    %21 = vector.load %arg4[%c0_9, %c0_10] : memref<256x128xbf16, #tpu.memory_space<vmem>>, vector<256x128xbf16>
    %cst_11 = arith.constant dense<0.000000e+00> : vector<16x128xf32>
    %22 = tpu.matmul %20, %21, %cst_11 {dimension_numbers = #tpu.dot_dimension_numbers<[1], [0], [0], [1], [0, 0, 1, 1], [], []>} : vector<16x256xbf16>, vector<256x128xbf16>, vector<16x128xf32> -> vector<16x128xf32>
    %c0_12 = arith.constant 0 : index
    %c0_13 = arith.constant 0 : index
    %23 = vector.load %arg5[%c0_12, %c0_13] : memref<1x128xf32, #tpu.memory_space<vmem>>, vector<1x128xf32>
    %24 = vector.broadcast %23 : vector<1x128xf32> to vector<16x128xf32>
    %25 = arith.addf %22, %24 : vector<16x128xf32>
    %26 = arith.addf %0, %25 : vector<16x128xf32>
    %c0_14 = arith.constant 0 : index
    %c0_15 = arith.constant 0 : index
    %27 = vector.load %arg6[%c0_14, %c0_15] : memref<1x128xf32, #tpu.memory_space<vmem>>, vector<1x128xf32>
    %c0_16 = arith.constant 0 : index
    %c0_17 = arith.constant 0 : index
    %28 = vector.load %arg7[%c0_16, %c0_17] : memref<1x128xf32, #tpu.memory_space<vmem>>, vector<1x128xf32>
    %cst_18 = arith.constant dense<0.000000e+00> : vector<16xf32>
    %29 = vector.multi_reduction <add>, %26, %cst_18 [1] : vector<16x128xf32> to vector<16xf32>
    %30 = vector.shape_cast %29 : vector<16xf32> to vector<16x1xf32>
    %cst_19 = arith.constant 1.280000e+02 : f32
    %31 = vector.broadcast %cst_19 : f32 to vector<16x1xf32>
    %32 = arith.divf %30, %31 : vector<16x1xf32>
    %33 = vector.broadcast %32 : vector<16x1xf32> to vector<16x128xf32>
    %34 = arith.subf %26, %33 : vector<16x128xf32>
    %35 = arith.mulf %34, %34 : vector<16x128xf32>
    %cst_20 = arith.constant dense<0.000000e+00> : vector<16xf32>
    %36 = vector.multi_reduction <add>, %35, %cst_20 [1] : vector<16x128xf32> to vector<16xf32>
    %37 = vector.shape_cast %36 : vector<16xf32> to vector<16x1xf32>
    %cst_21 = arith.constant 1.280000e+02 : f32
    %38 = vector.broadcast %cst_21 : f32 to vector<16x1xf32>
    %39 = arith.divf %37, %38 : vector<16x1xf32>
    %cst_22 = arith.constant 9.99999974E-6 : f32
    %40 = vector.broadcast %cst_22 : f32 to vector<16x1xf32>
    %41 = arith.addf %39, %40 : vector<16x1xf32>
    %42 = math.rsqrt %41 : vector<16x1xf32>
    %43 = vector.broadcast %42 : vector<16x1xf32> to vector<16x128xf32>
    %44 = arith.mulf %34, %43 : vector<16x128xf32>
    %45 = vector.broadcast %27 : vector<1x128xf32> to vector<16x128xf32>
    %46 = arith.mulf %44, %45 : vector<16x128xf32>
    %47 = vector.broadcast %28 : vector<1x128xf32> to vector<16x128xf32>
    %48 = arith.addf %46, %47 : vector<16x128xf32>
    %c0_23 = arith.constant 0 : index
    %c0_24 = arith.constant 0 : index
    %49 = vector.load %arg8[%c0_23, %c0_24] : memref<16x128xf32, #tpu.memory_space<vmem>>, vector<16x128xf32>
    tpu.vector_store %arg8[%c0_23, %c0_24], %48 {strides = array<i32>} : memref<16x128xf32, #tpu.memory_space<vmem>>, vector<16x128xf32>,
    return
  }
  func.func @transform_0(%arg0: i32) -> (i32, i32) {
    %c0_i32 = arith.constant 0 : i32
    %c0_i32_0 = arith.constant 0 : i32
    return %arg0, %c0_i32 : i32, i32
  }
  func.func @transform_1(%arg0: i32) -> (i32, i32) {
    %c0_i32 = arith.constant 0 : i32
    %c0_i32_0 = arith.constant 0 : i32
    %c0_i32_1 = arith.constant 0 : i32
    return %c0_i32, %c0_i32_0 : i32, i32
  }
  func.func @transform_2(%arg0: i32) -> (i32, i32) {
    %c0_i32 = arith.constant 0 : i32
    %c0_i32_0 = arith.constant 0 : i32
    %c0_i32_1 = arith.constant 0 : i32
    return %c0_i32, %c0_i32_0 : i32, i32
  }
  func.func @transform_3(%arg0: i32) -> (i32, i32) {
    %c0_i32 = arith.constant 0 : i32
    %c0_i32_0 = arith.constant 0 : i32
    %c0_i32_1 = arith.constant 0 : i32
    return %c0_i32, %c0_i32_0 : i32, i32
  }
  func.func @transform_4(%arg0: i32) -> (i32, i32) {
    %c0_i32 = arith.constant 0 : i32
    %c0_i32_0 = arith.constant 0 : i32
    %c0_i32_1 = arith.constant 0 : i32
    return %c0_i32, %c0_i32_0 : i32, i32
  }
  func.func @transform_5(%arg0: i32) -> (i32, i32) {
    %c0_i32 = arith.constant 0 : i32
    %c0_i32_0 = arith.constant 0 : i32
    %c0_i32_1 = arith.constant 0 : i32
    return %c0_i32, %c0_i32_0 : i32, i32
  }
  func.func @transform_6(%arg0: i32) -> (i32, i32) {
    %c0_i32 = arith.constant 0 : i32
    %c0_i32_0 = arith.constant 0 : i32
    %c0_i32_1 = arith.constant 0 : i32
    return %c0_i32, %c0_i32_0 : i32, i32
  }
  func.func @transform_7(%arg0: i32) -> (i32, i32) {
    %c0_i32 = arith.constant 0 : i32
    %c0_i32_0 = arith.constant 0 : i32
    return %arg0, %c0_i32 : i32, i32
  }
}

</mosaic_0001>

<bundles_post_ra>
// kernel: tr_decoder_forward.8
= control target key start
LH: loop header
LB: loop body
LE: loop exit
PB: predicated region body
PF: predicated region fallthrough
CT: control target
= control target key end

     0   :  { %v554_v1 = vmov 0   ;;  %v48_v36 = vlaneseq  ;;  %s723_s1 = inlined_call_operand.vmem [shape: bf16[128,256], index: 1, kind: input, shape index: {}]   ;;  %s724_s0 = inlined_call_operand.vmem [shape: f32[16,128], index: 0, kind: input, shape index: {}]   ;;  %s725_s3 = inlined_call_operand.vmem [shape: bf16[256,128], index: 3, kind: input, shape index: {}]   ;;  %s726_s2 = inlined_call_operand.vmem [shape: f32[1,256], index: 2, kind: input, shape index: {}]   ;;  %s727_s4 = inlined_call_operand.vmem [shape: f32[1,128], index: 4, kind: input, shape index: {}]   ;;  %s728_s5 = inlined_call_operand.vmem [shape: f32[1,128], index: 5, kind: input, shape index: {}]   ;;  %s729_s6 = inlined_call_operand.vmem [shape: f32[1,128], index: 6, kind: input, shape index: {}]   ;;  %s730_s7 = inlined_call_operand.vmem [shape: f32[16,128], index: 7, kind: output, shape index: {}]  }
   0x1   :  { %v502_v0 = vld [vmem:[%s723_s1 + $0x74] ss:$8 sps:$4 sm:$0xff]   ;;  %170 = vmatprep.mubr.bf16.mxu0 %v554_v1  ;;  %v504_v2 = vld [vmem:[%s723_s1 + $0x70] ss:$8 sps:$4 sm:$0xff]   ;;  %v505_v3 = vld [vmem:[%s723_s1 + $0x64] ss:$8 sps:$4 sm:$0xff]  }
   0x2   :  { %138 = vmatprep.subr.bf16.mxu0 %v502_v0  ;;  %v507_v4 = vld [vmem:[%s723_s1 + $0x60] ss:$8 sps:$4 sm:$0xff]   ;;  %v508_v5 = vld [vmem:[%s723_s1 + $0x54] ss:$8 sps:$4 sm:$0xff]   ;;  %v510_v6 = vld [vmem:[%s723_s1 + $0x50] ss:$8 sps:$4 sm:$0xff]  }
   0x3   :  { %139 = vmatpush1.bf16.msra.mxu0 %v504_v2  ;;  %v511_v7 = vld [vmem:[%s723_s1 + $0x44] ss:$8 sps:$4 sm:$0xff]   ;;  %v513_v8 = vld [vmem:[%s723_s1 + $0x40] ss:$8 sps:$4 sm:$0xff]   ;;  %v514_v9 = vld [vmem:[%s723_s1 + $0x34] ss:$8 sps:$4 sm:$0xff]  }
   0x4   :  { %140 = vmatprep.subr.bf16.mxu0 %v505_v3  ;;  %v516_v10 = vld [vmem:[%s723_s1 + $0x30] ss:$8 sps:$4 sm:$0xff]   ;;  %v517_v11 = vld [vmem:[%s723_s1 + $0x24] ss:$8 sps:$4 sm:$0xff]   ;;  %v519_v12 = vld [vmem:[%s723_s1 + $0x20] ss:$8 sps:$4 sm:$0xff]  }
   0x5   :  { %v520_v13 = vld [vmem:[%s723_s1 + $0x14] ss:$8 sps:$4 sm:$0xff]   ;;  %v522_v14 = vld [vmem:[%s723_s1 + $0x10] ss:$8 sps:$4 sm:$0xff]   ;;  %v523_v15 = vld [vmem:[%s723_s1 + $0x4] ss:$8 sps:$4 sm:$0xff]  }
   0x6   :  { %v525_v16 = vld [vmem:[%s723_s1] ss:$8 sps:$4 sm:$0xff]   ;;  %v526_v20 = vld [vmem:[%s725_s3 + $0x78] sm:$0xff]   ;;  %v528_v22 = vld [vmem:[%s725_s3 + $0x70] sm:$0xff]   ;;  %v49_v37 = vshrl.u32 %v48_v36, 7 }
   0x7   :  { %141 = vmatpush1.bf16.msra.mxu0 %v507_v4  ;;  %v646_v17 = vld [vmem:[%s724_s0] sm:$0xff]  ;;  %v651_v18 = vld [vmem:[%s724_s0 + $0x8] sm:$0xff]  ;;  %v527_v21 = vld [vmem:[%s725_s3 + $0x38] sm:$0xff]   ;;  %479 = vmatprep.subr.bf16.mxu1 %v526_v20 }
   0x8   :  { %142 = vmatprep.subr.bf16.mxu0 %v508_v5  ;;  %v29_v19 = vpack.c.bf16 %v651_v18, %v646_v17  ;;  %480 = vmatpush3.bf16.msra.mxu1 %v527_v21  ;;  %v529_v23 = vld [vmem:[%s725_s3 + $0x30] sm:$0xff]   ;;  %v530_v24 = vld [vmem:[%s725_s3 + $0x68] sm:$0xff]   ;;  %v532_v26 = vld [vmem:[%s725_s3 + $0x60] sm:$0xff]   ;;  %v50_v38 = vsub.s32 0, %v49_v37  ;;  %v54_v40 = vsub.s32 1, %v49_v37 }
   0x9   :  { %481 = vmatprep.subr.bf16.mxu1 %v528_v22  ;;  %v531_v25 = vld [vmem:[%s725_s3 + $0x28] sm:$0xff]   ;;  %v533_v27 = vld [vmem:[%s725_s3 + $0x20] sm:$0xff]   ;;  %v534_v28 = vld [vmem:[%s725_s3 + $0x58] sm:$0xff]  }
   0xa   :  { %v535_v29 = vld [vmem:[%s725_s3 + $0x18] sm:$0xff]   ;;  %v536_v30 = vld [vmem:[%s725_s3 + $0x50] sm:$0xff]   ;;  %v538_v32 = vld [vmem:[%s725_s3 + $0x48] sm:$0xff]  }
   0xb   :  { %143 = vmatpush1.bf16.msra.mxu0 %v510_v6  ;;  %v537_v31 = vld [vmem:[%s725_s3 + $0x10] sm:$0xff]   ;;  %v539_v33 = vld [vmem:[%s725_s3 + $0x8] sm:$0xff]   ;;  %v540_v34 = vld [vmem:[%s725_s3 + $0x40] sm:$0xff]  }
   0xc   :  { %144 = vmatprep.subr.bf16.mxu0 %v511_v7  ;;  %482 = vmatpush3.bf16.msra.mxu1 %v529_v23  ;;  %v541_v35 = vld [vmem:[%s725_s3] sm:$0xff]  }
   0xd   :  { %483 = vmatprep.subr.bf16.mxu1 %v530_v24  ;;  %v46_v39 = vld [vmem:[%s726_s2] sm:$0x3] }
   0xe   :  { %v51_v41 = vrot.slane %v46_v39, %v50_v38  ;;  %v55_v42 = vrot.slane %v46_v39, %v54_v40 }
   0xf   :  { %145 = vmatpush1.bf16.msra.mxu0 %v513_v8 }
  0x10   :  { %146 = vmatprep.subr.bf16.mxu0 %v514_v9  ;;  %484 = vmatpush3.bf16.msra.mxu1 %v531_v25 }
  0x11   :  { %485 = vmatprep.subr.bf16.mxu1 %v532_v26 }
  0x13   :  { %147 = vmatpush1.bf16.msra.mxu0 %v516_v10 }
  0x14   :  { %148 = vmatprep.subr.bf16.mxu0 %v517_v11  ;;  %486 = vmatpush3.bf16.msra.mxu1 %v533_v27 }
  0x15   :  { %487 = vmatprep.subr.bf16.mxu1 %v534_v28  ;;  %v460_v28 = vld [vmem:[%s727_s4] ss:$0 sm:$0xff] }
  0x17   :  { %149 = vmatpush1.bf16.msra.mxu0 %v519_v12 }
  0x18   :  { %150 = vmatprep.subr.bf16.mxu0 %v520_v13  ;;  %488 = vmatpush3.bf16.msra.mxu1 %v535_v29 }
  0x19   :  { %489 = vmatprep.subr.bf16.mxu1 %v536_v30 }
  0x1b   :  { %151 = vmatpush1.bf16.msra.mxu0 %v522_v14 }
  0x1c   :  { %152 = vmatprep.subr.bf16.mxu0 %v523_v15  ;;  %490 = vmatpush3.bf16.msra.mxu1 %v537_v31 }
  0x1d   :  { %491 = vmatprep.subr.bf16.mxu1 %v538_v32 }
  0x1f   :  { %153 = vmatpush1.bf16.msra.mxu0 %v525_v16 }
  0x20   :  { %492 = vmatpush3.bf16.msra.mxu1 %v539_v33 }
  0x21   :  { %493 = vmatprep.subr.bf16.mxu1 %v540_v34 }
  0x22   :  { %171 = vmatmul.mubr.bf16.vlgmr.msra.gmra.mxu0 %v29_v19 }
  0x24   :  { %494 = vmatpush3.bf16.msra.mxu1 %v541_v35 }
  0xe2   :  { %v172_v43 = vpop.f32.mrf.mxu0 }
  0xe3   :  { %v173_v44 = vadd.f32 %v172_v43, %v51_v41 }
  0xe4   :  { %v174_v45 = vpop.f32.mrf.mxu0 }
  0xe5   :  { %v185_v46 = vmul.f32 0.044715, %v173_v44  ;;  %v175_v47 = vadd.f32 %v174_v45, %v55_v42  ;;  %v181_v20 = vmul.f32 0.5, %v173_v44 }
  0xe6   :  { %v176_v48 = vpop.f32.mrf.mxu0 }
  0xe7   :  { %v189_v49 = vmul.f32 %v185_v46, %v173_v44  ;;  %v186_v50 = vmul.f32 0.044715, %v175_v47  ;;  %v177_v51 = vadd.f32 %v176_v48, %v51_v41  ;;  %v182_v15 = vmul.f32 0.5, %v175_v47 }
  0xe8   :  { %v178_v52 = vpop.f32.mrf.mxu0 }
  0xe9   :  { %v193_v53 = vmul.f32 %v189_v49, %v173_v44  ;;  %v187_v54 = vmul.f32 0.044715, %v177_v51  ;;  %v179_v55 = vadd.f32 %v178_v52, %v55_v42  ;;  %v190_v56 = vmul.f32 %v186_v50, %v175_v47 }
  0xea   :  { %v183_v13 = vmul.f32 0.5, %v177_v51 }
  0xeb   :  { %v191_v57 = vmul.f32 %v187_v54, %v177_v51  ;;  %v188_v58 = vmul.f32 0.044715, %v179_v55  ;;  %v194_v59 = vmul.f32 %v190_v56, %v175_v47  ;;  %v197_v60 = vadd.f32 %v193_v53, %v173_v44  ;;  %v478_v53 = vld [vmem:[%s729_s6] ss:$0 sm:$0xff] }
  0xec   :  { %v184_v16 = vmul.f32 0.5, %v179_v55 }
  0xed   :  { %v195_v61 = vmul.f32 %v191_v57, %v177_v51  ;;  %v192_v62 = vmul.f32 %v188_v58, %v179_v55  ;;  %v198_v63 = vadd.f32 %v194_v59, %v175_v47  ;;  %v201_v0 = vmul.f32 0.7978846, %v197_v60 }
  0xef   :  { %v196_v1 = vmul.f32 %v192_v62, %v179_v55  ;;  %v202_v2 = vmul.f32 0.7978846, %v198_v63  ;;  %v199_v3 = vadd.f32 %v195_v61, %v177_v51  ;;  %v477_v51 = vld [vmem:[%s728_s5] ss:$0 sm:$0xff] }
  0xf1   :  { %v200_v4 = vadd.f32 %v196_v1, %v179_v55  ;;  %542 = vtanh.f32 %v202_v2  ;;  %v203_v5 = vmul.f32 0.7978846, %v199_v3 }
  0xf2   :  { %544 = vtanh.f32 %v201_v0 }
  0xf3   :  { %v204_v6 = vmul.f32 0.7978846, %v200_v4  ;;  %546 = vtanh.f32 %v203_v5 }
  0xf5   :  { %548 = vtanh.f32 %v204_v6 }
  0xfe   :  { %v543_v7 = vpop.eup %542 }
  0xff   :  { %v545_v8 = vpop.eup %544  ;;  %v210_v10 = vadd.f32 1.0, %v543_v7 }
 0x100   :  { %v547_v9 = vpop.eup %546  ;;  %v209_v14 = vadd.f32 1.0, %v545_v8 }
 0x101   :  { %v211_v11 = vadd.f32 1.0, %v547_v9  ;;  %v214_v22 = vmul.f32 %v210_v10, %v182_v15 }
 0x102   :  { %v549_v12 = vpop.eup %548  ;;  %v213_v24 = vmul.f32 %v209_v14, %v181_v20 }
 0x103   :  { %v212_v19 = vadd.f32 1.0, %v549_v12  ;;  %v215_v21 = vmul.f32 %v211_v11, %v183_v13 }
 0x105   :  { %v216_v23 = vmul.f32 %v212_v19, %v184_v16  ;;  %v217_v26 = vpack.c.bf16 %v215_v21, %v213_v24 }
 0x107   :  { %v218_v25 = vpack.c.bf16 %v216_v23, %v214_v22 }
 0x109   :  { %386 = vmatprep.mubr.bf16.mxu1 %v218_v25 }
 0x10a   :  { %387 = vmatmul.mubr.bf16.vlgmr.msra.gmra.mxu1 %v217_v26 }
 0x1ca   :  { %v495_v27 = vpop.f32.mrf.mxu1 }
 0x1cc   :  { %v496_v29 = vpop.f32.mrf.mxu1 }
 0x1cd   :  { %v497_v30 = vadd.f32 %v496_v29, %v495_v27 }
 0x1ce   :  { %v498_v31 = vpop.f32.mrf.mxu1 }
 0x1cf   :  { %v389_v32 = vadd.f32 %v497_v30, %v460_v28 }
 0x1d0   :  { %v499_v33 = vpop.f32.mrf.mxu1 }
 0x1d1   :  { %v500_v34 = vadd.f32 %v499_v33, %v498_v31  ;;  %v395_v35 = vadd.f32 %v389_v32, %v646_v17 }
 0x1d3   :  { %v392_v36 = vadd.f32 %v500_v34, %v460_v28  ;;  %399 = vadd.xlane.f32.xlu0 %v395_v35 }
 0x1d5   :  { %v396_v37 = vadd.f32 %v392_v36, %v651_v18 }
 0x1d7   :  { %401 = vadd.xlane.f32.xlu0 %v396_v37 }
 0x25c   :  { %v400_v38 = vpop.xlane.xlu0 %399 }
 0x25d   :  { %v404_v39 = vmul.f32 0.0078125, %v400_v38 }
 0x25f   :  { %v406_v40 = vsub.f32 %v395_v35, %v404_v39 }
 0x260   :  { %v402_v41 = vpop.xlane.xlu0 %401 }
 0x261   :  { %v405_v42 = vmul.f32 0.0078125, %v402_v41  ;;  %v408_v43 = vmul.f32 %v406_v40, %v406_v40 }
 0x263   :  { %v407_v44 = vsub.f32 %v396_v37, %v405_v42  ;;  %410 = vadd.xlane.f32.xlu1 %v408_v43 }
 0x265   :  { %v409_v45 = vmul.f32 %v407_v44, %v407_v44 }
 0x267   :  { %412 = vadd.xlane.f32.xlu1 %v409_v45 }
 0x2ec   :  { %v411_v46 = vpop.xlane.xlu1 %410 }
 0x2ed   :  { %v414_v47 = vmul.f32 0.0078125, %v411_v46 }
 0x2ef   :  { %v416_v48 = vadd.f32 1e-05, %v414_v47 }
 0x2f0   :  { %v413_v49 = vpop.xlane.xlu1 %412 }
 0x2f1   :  { %550 = vrsqrt.f32 %v416_v48  ;;  %v415_v17 = vmul.f32 0.0078125, %v413_v49 }
 0x2f3   :  { %v417_v50 = vadd.f32 1e-05, %v415_v17 }
 0x2f5   :  { %552 = vrsqrt.f32 %v417_v50 }
 0x2fe   :  { %v551_v18 = vpop.eup %550 }
 0x2ff   :  { %v420_v52 = vmul.f32 %v551_v18, %v406_v40 }
 0x301   :  { %v428_v54 = vmul.f32 %v477_v51, %v420_v52 }
 0x302   :  { %v553_v55 = vpop.eup %552 }
 0x303   :  { %v436_v56 = vadd.f32 %v478_v53, %v428_v54  ;;  %v421_v57 = vmul.f32 %v553_v55, %v407_v44 }
 0x305   :  { %438 = vst [vmem:[%s730_s7] sm:$0xff] %v436_v56  ;;  %v429_v58 = vmul.f32 %v477_v51, %v421_v57 }
 0x307   :  { %v437_v59 = vadd.f32 %v478_v53, %v429_v58 }
 0x309   :  { %439 = vst [vmem:[%s730_s7 + $0x8] sm:$0xff] %v437_v59 }

// kernel: tr_decoder_forward.11
= control target key start
LH: loop header
LB: loop body
LE: loop exit
PB: predicated region body
PF: predicated region fallthrough
CT: control target
= control target key end

     0   :  { %v592_v2 = vmov 0   ;;  %s761_s0 = inlined_call_operand.vmem [shape: f32[16,128], index: 0, kind: input, shape index: {}]   ;;  %s762_s1 = inlined_call_operand.vmem [shape: bf16[128,256], index: 1, kind: input, shape index: {}]   ;;  %s763_s2 = inlined_call_operand.vmem [shape: f32[1,256], index: 2, kind: input, shape index: {}]   ;;  %s764_s3 = inlined_call_operand.vmem [shape: bf16[256,128], index: 3, kind: input, shape index: {}]   ;;  %s765_s4 = inlined_call_operand.vmem [shape: f32[1,128], index: 4, kind: input, shape index: {}]   ;;  %s766_s5 = inlined_call_operand.vmem [shape: f32[1,128], index: 5, kind: input, shape index: {}]   ;;  %s767_s6 = inlined_call_operand.vmem [shape: f32[1,128], index: 6, kind: input, shape index: {}]   ;;  %s768_s7 = inlined_call_operand.hbm [shape: f32[16,128], index: 7, kind: output, shape index: {}]  }
   0x1   :  { %v518_v0 = vld [vmem:[%s762_s1 + $0x74] ss:$8 sps:$4 sm:$0xff]   ;;  %v520_v1 = vld [vmem:[%s762_s1 + $0x70] ss:$8 sps:$4 sm:$0xff]   ;;  %171 = vmatprep.mubr.bf16.mxu0 %v592_v2  ;;  %v521_v3 = vld [vmem:[%s762_s1 + $0x64] ss:$8 sps:$4 sm:$0xff]  }
   0x2   :  { %139 = vmatprep.subr.bf16.mxu0 %v518_v0  ;;  %v523_v4 = vld [vmem:[%s762_s1 + $0x60] ss:$8 sps:$4 sm:$0xff]   ;;  %v524_v5 = vld [vmem:[%s762_s1 + $0x54] ss:$8 sps:$4 sm:$0xff]   ;;  %v526_v6 = vld [vmem:[%s762_s1 + $0x50] ss:$8 sps:$4 sm:$0xff]  }
   0x3   :  { %140 = vmatpush1.bf16.msra.mxu0 %v520_v1  ;;  %v527_v7 = vld [vmem:[%s762_s1 + $0x44] ss:$8 sps:$4 sm:$0xff]   ;;  %v529_v8 = vld [vmem:[%s762_s1 + $0x40] ss:$8 sps:$4 sm:$0xff]   ;;  %v530_v9 = vld [vmem:[%s762_s1 + $0x34] ss:$8 sps:$4 sm:$0xff]  }
   0x4   :  { %141 = vmatprep.subr.bf16.mxu0 %v521_v3  ;;  %v532_v10 = vld [vmem:[%s762_s1 + $0x30] ss:$8 sps:$4 sm:$0xff]   ;;  %v533_v11 = vld [vmem:[%s762_s1 + $0x24] ss:$8 sps:$4 sm:$0xff]   ;;  %v535_v12 = vld [vmem:[%s762_s1 + $0x20] ss:$8 sps:$4 sm:$0xff]  }
   0x5   :  { %v536_v13 = vld [vmem:[%s762_s1 + $0x14] ss:$8 sps:$4 sm:$0xff]  }
   0x7   :  { %142 = vmatpush1.bf16.msra.mxu0 %v523_v4 }
   0x8   :  { %143 = vmatprep.subr.bf16.mxu0 %v524_v5 }
   0xb   :  { %144 = vmatpush1.bf16.msra.mxu0 %v526_v6 }
   0xc   :  { %145 = vmatprep.subr.bf16.mxu0 %v527_v7 }
   0xf   :  { %146 = vmatpush1.bf16.msra.mxu0 %v529_v8 }
  0x10   :  { %147 = vmatprep.subr.bf16.mxu0 %v530_v9 }
  0x13   :  { %148 = vmatpush1.bf16.msra.mxu0 %v532_v10 }
  0x14   :  { %149 = vmatprep.subr.bf16.mxu0 %v533_v11 }
  0x15   :  { %12 = vsyncpa [#allocation3], 0  ;;  %v538_v14 = vld [vmem:[%s762_s1 + $0x10] ss:$8 sps:$4 sm:$0xff]   ;;  %v539_v15 = vld [vmem:[%s762_s1 + $0x4] ss:$8 sps:$4 sm:$0xff]   ;;  %v49_v36 = vlaneseq }
  0x16   :  { %v541_v16 = vld [vmem:[%s762_s1] ss:$8 sps:$4 sm:$0xff]   ;;  %v542_v20 = vld [vmem:[%s764_s3 + $0x78] sm:$0xff]   ;;  %v544_v22 = vld [vmem:[%s764_s3 + $0x70] sm:$0xff]   ;;  %s593_s24 = smov [#allocation2]  }
  0x17   :  { %150 = vmatpush1.bf16.msra.mxu0 %v535_v12  ;;  %v687_v17 = vld [vmem:[%s761_s0] sm:$0xff]  ;;  %v692_v18 = vld [vmem:[%s761_s0 + $0x8] sm:$0xff]  ;;  %v543_v21 = vld [vmem:[%s764_s3 + $0x38] sm:$0xff]   ;;  %492 = vmatprep.subr.bf16.mxu1 %v542_v20  ;;  %v50_v37 = vshrl.u32 %v49_v36, 7  ;;  %s446_s25 = sshll.u32 %s593_s24, 4  ;;  %s447_s25 = int_to_ptr.vmem [resolvable:$true] %s446_s25 }
  0x18   :  { %151 = vmatprep.subr.bf16.mxu0 %v536_v13  ;;  %v30_v19 = vpack.c.bf16 %v692_v18, %v687_v17  ;;  %493 = vmatpush3.bf16.msra.mxu1 %v543_v21  ;;  %v545_v23 = vld [vmem:[%s764_s3 + $0x30] sm:$0xff]   ;;  %v546_v24 = vld [vmem:[%s764_s3 + $0x68] sm:$0xff]   ;;  %v548_v26 = vld [vmem:[%s764_s3 + $0x60] sm:$0xff]   ;;  %s570_s26 = scalar_lea.vmem %s447_s25, 256  ;;  %p575_p1 = scmp.lt.s32.totalorder %s447_s25, %s447_s25 }
  0x19   :  { %494 = vmatprep.subr.bf16.mxu1 %v544_v22  ;;  %v547_v25 = vld [vmem:[%s764_s3 + $0x28] sm:$0xff]   ;;  %v549_v27 = vld [vmem:[%s764_s3 + $0x20] sm:$0xff]   ;;  %v550_v28 = vld [vmem:[%s764_s3 + $0x58] sm:$0xff]   ;;  %v51_v38 = vsub.s32 0, %v50_v37  ;;  %v55_v40 = vsub.s32 1, %v50_v37  ;;  %p571_p0 = scmp.ne.s32.totalorder %s447_s25, %s570_s26  ;;  %p576_p2 = scmp.lt.s32.totalorder %s570_s26, %s570_s26 }
  0x1a   :  { %v551_v29 = vld [vmem:[%s764_s3 + $0x18] sm:$0xff]   ;;  %v552_v30 = vld [vmem:[%s764_s3 + $0x50] sm:$0xff]   ;;  %v554_v32 = vld [vmem:[%s764_s3 + $0x48] sm:$0xff]  }
  0x1b   :  { %152 = vmatpush1.bf16.msra.mxu0 %v538_v14  ;;  %v553_v31 = vld [vmem:[%s764_s3 + $0x10] sm:$0xff]   ;;  %v555_v33 = vld [vmem:[%s764_s3 + $0x8] sm:$0xff]   ;;  %v556_v34 = vld [vmem:[%s764_s3 + $0x40] sm:$0xff]   ;;  %p577_p3 = por %p576_p2, %p575_p1 }
  0x1c   :  { %153 = vmatprep.subr.bf16.mxu0 %v539_v15  ;;  %495 = vmatpush3.bf16.msra.mxu1 %v545_v23  ;;  %v557_v35 = vld [vmem:[%s764_s3] sm:$0xff]  }
  0x1d   :  { %496 = vmatprep.subr.bf16.mxu1 %v546_v24  ;;  %v47_v39 = vld [vmem:[%s763_s2] sm:$0x3]  ;;  %p578_p4 = pnand %p577_p3, %p571_p0 }
  0x1e   :  { %v52_v41 = vrot.slane %v47_v39, %v51_v38  ;;  %v56_v42 = vrot.slane %v47_v39, %v55_v40 }
  0x1f   :  { %154 = vmatpush1.bf16.msra.mxu0 %v541_v16 }
  0x20   :  { %497 = vmatpush3.bf16.msra.mxu1 %v547_v25 }
  0x21   :  { %498 = vmatprep.subr.bf16.mxu1 %v548_v26 }
  0x22   :  { %172 = vmatmul.mubr.bf16.vlgmr.msra.gmra.mxu0 %v30_v19 }
  0x24   :  { %499 = vmatpush3.bf16.msra.mxu1 %v549_v27 }
  0x25   :  { %500 = vmatprep.subr.bf16.mxu1 %v550_v28  ;;  %v473_v28 = vld [vmem:[%s765_s4] ss:$0 sm:$0xff] }
  0x28   :  { %501 = vmatpush3.bf16.msra.mxu1 %v551_v29 }
  0x29   :  { %502 = vmatprep.subr.bf16.mxu1 %v552_v30 }
  0x2c   :  { %503 = vmatpush3.bf16.msra.mxu1 %v553_v31 }
  0x2d   :  { %504 = vmatprep.subr.bf16.mxu1 %v554_v32 }
  0x30   :  { %505 = vmatpush3.bf16.msra.mxu1 %v555_v33 }
  0x31   :  { %506 = vmatprep.subr.bf16.mxu1 %v556_v34 }
  0x34   :  { %507 = vmatpush3.bf16.msra.mxu1 %v557_v35 }
  0xe2   :  { %v173_v43 = vpop.f32.mrf.mxu0 }
  0xe3   :  { %v174_v44 = vadd.f32 %v173_v43, %v52_v41 }
  0xe4   :  { %v175_v45 = vpop.f32.mrf.mxu0 }
  0xe5   :  { %v186_v46 = vmul.f32 0.044715, %v174_v44  ;;  %v176_v47 = vadd.f32 %v175_v45, %v56_v42  ;;  %v182_v20 = vmul.f32 0.5, %v174_v44 }
  0xe6   :  { %v177_v48 = vpop.f32.mrf.mxu0 }
  0xe7   :  { %v190_v49 = vmul.f32 %v186_v46, %v174_v44  ;;  %v187_v50 = vmul.f32 0.044715, %v176_v47  ;;  %v178_v51 = vadd.f32 %v177_v48, %v52_v41  ;;  %v183_v15 = vmul.f32 0.5, %v176_v47 }
  0xe8   :  { %v179_v52 = vpop.f32.mrf.mxu0 }
  0xe9   :  { %v194_v53 = vmul.f32 %v190_v49, %v174_v44  ;;  %v188_v54 = vmul.f32 0.044715, %v178_v51  ;;  %v180_v55 = vadd.f32 %v179_v52, %v56_v42  ;;  %v191_v56 = vmul.f32 %v187_v50, %v176_v47 }
  0xea   :  { %v184_v13 = vmul.f32 0.5, %v178_v51 }
  0xeb   :  { %v192_v57 = vmul.f32 %v188_v54, %v178_v51  ;;  %v189_v58 = vmul.f32 0.044715, %v180_v55  ;;  %v195_v59 = vmul.f32 %v191_v56, %v176_v47  ;;  %v198_v60 = vadd.f32 %v194_v53, %v174_v44  ;;  %v491_v53 = vld [vmem:[%s767_s6] ss:$0 sm:$0xff] }
  0xec   :  { %v185_v16 = vmul.f32 0.5, %v180_v55 }
  0xed   :  { %v196_v61 = vmul.f32 %v192_v57, %v178_v51  ;;  %v193_v62 = vmul.f32 %v189_v58, %v180_v55  ;;  %v199_v63 = vadd.f32 %v195_v59, %v176_v47  ;;  %v202_v0 = vmul.f32 0.7978846, %v198_v60 }
  0xef   :  { %v197_v1 = vmul.f32 %v193_v62, %v180_v55  ;;  %v203_v2 = vmul.f32 0.7978846, %v199_v63  ;;  %v200_v3 = vadd.f32 %v196_v61, %v178_v51  ;;  %v490_v51 = vld [vmem:[%s766_s5] ss:$0 sm:$0xff] }
  0xf1   :  { %v201_v4 = vadd.f32 %v197_v1, %v180_v55  ;;  %558 = vtanh.f32 %v203_v2  ;;  %v204_v5 = vmul.f32 0.7978846, %v200_v3 }
  0xf2   :  { %560 = vtanh.f32 %v202_v0 }
  0xf3   :  { %v205_v6 = vmul.f32 0.7978846, %v201_v4  ;;  %562 = vtanh.f32 %v204_v5 }
  0xf5   :  { %564 = vtanh.f32 %v205_v6 }
  0xfe   :  { %v559_v7 = vpop.eup %558 }
  0xff   :  { %v561_v8 = vpop.eup %560  ;;  %v211_v10 = vadd.f32 1.0, %v559_v7 }
 0x100   :  { %v563_v9 = vpop.eup %562  ;;  %v210_v14 = vadd.f32 1.0, %v561_v8 }
 0x101   :  { %v212_v11 = vadd.f32 1.0, %v563_v9  ;;  %v215_v22 = vmul.f32 %v211_v10, %v183_v15 }
 0x102   :  { %v565_v12 = vpop.eup %564  ;;  %v214_v24 = vmul.f32 %v210_v14, %v182_v20 }
 0x103   :  { %v213_v19 = vadd.f32 1.0, %v565_v12  ;;  %v216_v21 = vmul.f32 %v212_v11, %v184_v13 }
 0x105   :  { %v217_v23 = vmul.f32 %v213_v19, %v185_v16  ;;  %v218_v26 = vpack.c.bf16 %v216_v21, %v214_v24 }
 0x107   :  { %v219_v25 = vpack.c.bf16 %v217_v23, %v215_v22 }
 0x109   :  { %387 = vmatprep.mubr.bf16.mxu1 %v219_v25 }
 0x10a   :  { %388 = vmatmul.mubr.bf16.vlgmr.msra.gmra.mxu1 %v218_v26 }
 0x1ca   :  { %v508_v27 = vpop.f32.mrf.mxu1 }
 0x1cc   :  { %v509_v29 = vpop.f32.mrf.mxu1 }
 0x1cd   :  { %v510_v30 = vadd.f32 %v509_v29, %v508_v27 }
 0x1ce   :  { %v511_v31 = vpop.f32.mrf.mxu1 }
 0x1cf   :  { %v390_v32 = vadd.f32 %v510_v30, %v473_v28 }
 0x1d0   :  { %v512_v33 = vpop.f32.mrf.mxu1 }
 0x1d1   :  { %v513_v34 = vadd.f32 %v512_v33, %v511_v31  ;;  %v396_v35 = vadd.f32 %v390_v32, %v687_v17 }
 0x1d3   :  { %v393_v36 = vadd.f32 %v513_v34, %v473_v28  ;;  %400 = vadd.xlane.f32.xlu0 %v396_v35 }
 0x1d5   :  { %v397_v37 = vadd.f32 %v393_v36, %v692_v18 }
 0x1d7   :  { %402 = vadd.xlane.f32.xlu0 %v397_v37 }
 0x25c   :  { %v401_v38 = vpop.xlane.xlu0 %400 }
 0x25d   :  { %v405_v39 = vmul.f32 0.0078125, %v401_v38 }
 0x25f   :  { %v407_v40 = vsub.f32 %v396_v35, %v405_v39 }
 0x260   :  { %v403_v41 = vpop.xlane.xlu0 %402 }
 0x261   :  { %v406_v42 = vmul.f32 0.0078125, %v403_v41  ;;  %v409_v43 = vmul.f32 %v407_v40, %v407_v40 }
 0x263   :  { %v408_v44 = vsub.f32 %v397_v37, %v406_v42  ;;  %411 = vadd.xlane.f32.xlu1 %v409_v43 }
 0x265   :  { %v410_v45 = vmul.f32 %v408_v44, %v408_v44 }
 0x267   :  { %413 = vadd.xlane.f32.xlu1 %v410_v45 }
 0x2ec   :  { %v412_v46 = vpop.xlane.xlu1 %411 }
 0x2ed   :  { %v415_v47 = vmul.f32 0.0078125, %v412_v46 }
 0x2ef   :  { %v417_v48 = vadd.f32 1e-05, %v415_v47 }
 0x2f0   :  { %v414_v49 = vpop.xlane.xlu1 %413 }
 0x2f1   :  { %566 = vrsqrt.f32 %v417_v48  ;;  %v416_v17 = vmul.f32 0.0078125, %v414_v49 }
 0x2f3   :  { %v418_v50 = vadd.f32 1e-05, %v416_v17 }
 0x2f5   :  { %568 = vrsqrt.f32 %v418_v50 }
 0x2fe   :  { %v567_v18 = vpop.eup %566 }
 0x2ff   :  { %v421_v52 = vmul.f32 %v567_v18, %v407_v40 }
 0x301   :  { %v429_v54 = vmul.f32 %v490_v51, %v421_v52 }
 0x302   :  { %v569_v55 = vpop.eup %568 }
 0x303   :  { %v422_v56 = vmul.f32 %v569_v55, %v408_v44  ;;  %v437_v57 = vadd.f32 %v491_v53, %v429_v54 }
 0x305   :  { %v430_v58 = vmul.f32 %v490_v51, %v422_v56  ;;  %439 = vst [vmem:[#allocation2] sm:$0xff] %v437_v57 }
 0x307   :  { %v438_v59 = vadd.f32 %v491_v53, %v430_v58 }
 0x309   :  { %440 = vst [vmem:[#allocation2 + $0x8] sm:$0xff] %v438_v59 }
 0x30a   :  { %581 = shalt.err (!%p578_p4)
}
 0x30b   :  { %s594_s5 = smov 128   ;;  %s595_s6 = smov 8  }
 0x30c   :  { %452 = dma.vmem_to_hbm [thread:$0]  %s447_s25, 256, %s768_s7, [#allocation3], %s594_s5, %s594_s5, %s595_s6  }
 0x30d   :  { %590 = dma.done.wait [#allocation3], 256  }
 0x30e   :  { %591 = vsyncadd [#allocation3], 4294967040 }
 0x30f   :  { %456 = vsyncpa [#allocation3], 1 }

// kernel: tr_decoder_forward.7
= control target key start
LH: loop header
LB: loop body
LE: loop exit
PB: predicated region body
PF: predicated region fallthrough
CT: control target
= control target key end

     0   :  { %s1831_s17 = smov 0   ;;  %s2097_s0 = inlined_call_operand.vmem [shape: f32[2,8,128], index: 0, kind: input, shape index: {}]   ;;  %s2098_s1 = inlined_call_operand.vmem [shape: bf16[2,8,128], index: 1, kind: input, shape index: {}]   ;;  %s2099_s2 = inlined_call_operand.vmem [shape: bf16[128,128], index: 2, kind: input, shape index: {}]   ;;  %s2100_s3 = inlined_call_operand.vmem [shape: f32[1,128], index: 3, kind: input, shape index: {}]   ;;  %s2101_s4 = inlined_call_operand.vmem [shape: bf16[128,256], index: 4, kind: input, shape index: {}]   ;;  %s2102_s5 = inlined_call_operand.vmem [shape: f32[1,256], index: 5, kind: input, shape index: {}]   ;;  %s2103_s6 = inlined_call_operand.vmem [shape: f32[2,1,8], index: 6, kind: input, shape index: {}]   ;;  %s2104_s7 = inlined_call_operand.vmem [shape: bf16[128,128], index: 7, kind: input, shape index: {}]   ;;  %s2105_s8 = inlined_call_operand.vmem [shape: f32[1,128], index: 8, kind: input, shape index: {}]   ;;  %s2106_s9 = inlined_call_operand.vmem [shape: f32[1,128], index: 9, kind: input, shape index: {}]   ;;  %s2107_s10 = inlined_call_operand.vmem [shape: f32[1,128], index: 10, kind: input, shape index: {}]   ;;  %s2108_s11 = inlined_call_operand.vmem [shape: f32[2,8,128], index: 11, kind: output, shape index: {}]  }
   0x1 LB: > { %s1489_s18 = sadd.s32 4294967295, %s1763_s17   ;;  %p1493_p0 = scmp.ge.s32.totalorder %s1763_s17, 1  ;;  %s1763_s17 = sphi %s1831_s17, %s21_s17  }
   0x2   : > { %p353_p1 = scmp.lt.s32.totalorder %s1763_s17, 3 }
   0x4   : > { %p354_p2 = pnand %p1493_p0, %p353_p1 }
   0x5   : > { %p398_p3 = scmp.lt.s32.totalorder (!%p354_p2), %s1489_s18, 1  ;;  %s1768_s29 = smov (!%p354_p2), 96  }
   0x6   : > { %357 = sbr.rel (%p354_p2) target bundleno = 2810 (0xafa), region = 64  ;;  %s1770_s26 = smov (!%p354_p2), 32  }
   0xb   : > { %v1699_v0 = vld [vmem:[%s2101_s4 + $0x74] ss:$8 sps:$4 sm:$0xff]   ;;  %v1701_v1 = vld [vmem:[%s2101_s4 + $0x70] ss:$8 sps:$4 sm:$0xff]   ;;  %v1765_v2 = vmov 0.0   ;;  %v1766_v3 = vmov 0   ;;  %v546_v29 = vlaneseq }
   0xc   : > { %1585 = vmatprep.subr.bf16.mxu0 %v1765_v2  ;;  %668 = vmatprep.mubr.bf16.mxu1 %v1766_v3  ;;  %v1702_v4 = vld [vmem:[%s2099_s2 + $0x38] sm:$0xff]   ;;  %v1703_v5 = vld [vmem:[%s2101_s4 + $0x64] ss:$8 sps:$4 sm:$0xff]   ;;  %v1705_v6 = vld [vmem:[%s2101_s4 + $0x60] ss:$8 sps:$4 sm:$0xff]   ;;  %vm1767_vm0 = vmmov 0  }
   0xd   : > { %636 = vmatprep.subr.bf16.mxu1 %v1699_v0  ;;  %1601 = vmatprep.mubr.msk.bf16.mxu0 %vm1767_vm0, %v1765_v2  ;;  %v1706_v7 = vld [vmem:[%s2099_s2 + $0x30] sm:$0xff]   ;;  %v1710_v10 = vld [vmem:[%s2099_s2 + $0x28] sm:$0xff]   ;;  %v1714_v13 = vld [vmem:[%s2099_s2 + $0x20] sm:$0xff]   ;;  %s2110_s18 = smov (!%p398_p3, %s1489_s18), 1  ;;  %v547_v30 = vshrl.u32 %v546_v29, 7  ;;  %vm697_vm1 = vcmask 261120  }
   0xe   : > { %637 = vmatpush1.bf16.msra.mxu1 %v1701_v1  ;;  %1586 = vmatpush3.bf16.msra.mxu0 %v1702_v4  ;;  %v1707_v8 = vld [vmem:[%s2101_s4 + $0x54] ss:$8 sps:$4 sm:$0xff]   ;;  %v1709_v9 = vld [vmem:[%s2101_s4 + $0x50] ss:$8 sps:$4 sm:$0xff]   ;;  %v1711_v11 = vld [vmem:[%s2101_s4 + $0x44] ss:$8 sps:$4 sm:$0xff]   ;;  %s408_s13 = scalar_lea.vmem %s2103_s6, %s2110_s18 }
   0xf   : > { %638 = vmatprep.subr.bf16.mxu1 %v1703_v5  ;;  %1587 = vmatprep.subr.bf16.mxu0 %v1765_v2  ;;  %v1713_v12 = vld [vmem:[%s2101_s4 + $0x40] ss:$8 sps:$4 sm:$0xff]   ;;  %v1715_v14 = vld [vmem:[%s2101_s4 + $0x34] ss:$8 sps:$4 sm:$0xff]   ;;  %v1717_v15 = vld [vmem:[%s2101_s4 + $0x30] ss:$8 sps:$4 sm:$0xff]  }
  0x10   : > { %v1718_v16 = vld [vmem:[%s2099_s2 + $0x18] sm:$0xff]   ;;  %v1719_v17 = vld [vmem:[%s2101_s4 + $0x24] ss:$8 sps:$4 sm:$0xff]   ;;  %v1721_v18 = vld [vmem:[%s2101_s4 + $0x20] ss:$8 sps:$4 sm:$0xff]   ;;  %s1494_s23 = sshll.u32 %s2110_s18, 3 }
  0x11   : > { %v1722_v19 = vld [vmem:[%s2099_s2 + $0x10] sm:$0xff]   ;;  %v1726_v22 = vld [vmem:[%s2099_s2 + $0x8] sm:$0xff]   ;;  %s1495_s30 = sshll.u32 %s2110_s18, 2  ;;  %s401_s14 = scalar_lea.vmem %s2097_s0, %s1494_s23  ;;  %v1730_v25 = vld [vmem:[%s2099_s2] sm:$0xff]   ;;  %v548_v31 = vsub.s32 0, %v547_v30  ;;  %v552_v33 = vsub.s32 1, %v547_v30 }
  0x12   : > { %639 = vmatpush1.bf16.msra.mxu1 %v1705_v6  ;;  %1588 = vmatpush3.bf16.msra.mxu0 %v1706_v7  ;;  %v1723_v20 = vld [vmem:[%s2101_s4 + $0x14] ss:$8 sps:$4 sm:$0xff]   ;;  %v1725_v21 = vld [vmem:[%s2101_s4 + $0x10] ss:$8 sps:$4 sm:$0xff]   ;;  %v1727_v23 = vld [vmem:[%s2101_s4 + $0x4] ss:$8 sps:$4 sm:$0xff]   ;;  %s405_s24 = scalar_lea.vmem %s2098_s1, %s1495_s30  ;;  %s412_s27 = scalar_lea.vmem %s2108_s11, %s1494_s23 }
  0x13   : > { %640 = vmatprep.subr.bf16.mxu1 %v1707_v8  ;;  %1589 = vmatprep.subr.bf16.mxu0 %v1765_v2  ;;  %v1729_v24 = vld [vmem:[%s2101_s4] ss:$8 sps:$4 sm:$0xff]   ;;  %vm768_vm2 = vcmask 1043456   ;;  %vm752_vm3 = vcmask 64512  }
  0x14   : > { %v1936_v26 = vld [vmem:[%s401_s14] sm:$0xff]  ;;  %s1769_s14 = smov 64   ;;  %v1731_v30 = vld [vmem:[%s2104_s7 + $0x8] sm:$0xff]  }
  0x15   : > { %v415_v27 = vld [vmem:[%s405_s24] sm:$0xf]  ;;  %v416_v28 = vpack.c.bf16 %v1936_v26, %v1936_v26 }
  0x16   : > { %641 = vmatpush1.bf16.msra.mxu1 %v1709_v9  ;;  %1590 = vmatpush3.bf16.msra.mxu0 %v1710_v10  ;;  %v544_v32 = vld [vmem:[%s2102_s5] sm:$0x3] }
  0x17   : > { %642 = vmatprep.subr.bf16.mxu1 %v1711_v11  ;;  %1591 = vmatprep.subr.bf16.mxu0 %v1765_v2  ;;  %v549_v34 = vrot.slane %v544_v32, %v548_v31  ;;  %v553_v35 = vrot.slane %v544_v32, %v552_v33  ;;  %v1497_v36 = vld [vmem:[%s2100_s3] ss:$0 sm:$0xff] }
  0x18   : > { %v1982_v57 = vld [vmem:[%s408_s13] ss:$0 sm:$0xff] }
  0x19   : > { %v1732_v32 = vld [vmem:[%s2104_s7] sm:$0xff]  }
  0x1a   : > { %643 = vmatpush1.bf16.msra.mxu1 %v1713_v12  ;;  %1592 = vmatpush3.bf16.msra.mxu0 %v1714_v13 }
  0x1b   : > { %644 = vmatprep.subr.bf16.mxu1 %v1715_v14  ;;  %1593 = vmatprep.subr.bf16.mxu0 %v1765_v2 }
  0x1e   : > { %645 = vmatpush1.bf16.msra.mxu1 %v1717_v15  ;;  %1594 = vmatpush3.bf16.msra.mxu0 %v1718_v16 }
  0x1f   : > { %646 = vmatprep.subr.bf16.mxu1 %v1719_v17  ;;  %1595 = vmatprep.subr.bf16.mxu0 %v1765_v2 }
  0x22   : > { %647 = vmatpush1.bf16.msra.mxu1 %v1721_v18  ;;  %1596 = vmatpush3.bf16.msra.mxu0 %v1722_v19 }
  0x23   : > { %648 = vmatprep.subr.bf16.mxu1 %v1723_v20  ;;  %1597 = vmatprep.subr.bf16.mxu0 %v1765_v2 }
  0x26   : > { %649 = vmatpush1.bf16.msra.mxu1 %v1725_v21  ;;  %1598 = vmatpush3.bf16.msra.mxu0 %v1726_v22  ;;  %v1733_v22 = vld [vmem:[%s2104_s7 + $0x18] sm:$0xff]  }
  0x27   : > { %650 = vmatprep.subr.bf16.mxu1 %v1727_v23  ;;  %1599 = vmatprep.subr.bf16.mxu0 %v1765_v2  ;;  %v1734_v23 = vld [vmem:[%s2104_s7 + $0x10] sm:$0xff]  }
  0x2a   : > { %651 = vmatpush1.bf16.msra.mxu1 %v1729_v24  ;;  %1600 = vmatpush3.bf16.msra.mxu0 %v1730_v25 }
  0x2b   : > { %1611 = vmatprep.subr.bf16.mxu1 %v1765_v2  ;;  %1605 = vmatprep.subr.bf16.mxu0 %v1765_v2 }
  0x2d   : > { %669 = vmatmul.mubr.bf16.vlgmr.msra.gmra.mxu1 %v415_v27  ;;  %1602 = vmatmul.mubr.bf16.vlgmr.msra.gmra.mxu0 %v416_v28 }
  0x2e   : > { %1613 = vmatprep.mubr.msk.bf16.mxu1 %vm1767_vm0, %v1765_v2  ;;  %1607 = vmatprep.mubr.msk.bf16.mxu0 %vm1767_vm0, %v1765_v2 }
  0xed   : > { %v670_v37 = vpop.f32.mrf.mxu1  ;;  %v522_v39 = vpop.f32.mrf.mxu0 }
  0xee   : > { %v671_v38 = vadd.f32 %v670_v37, %v549_v34  ;;  %v523_v41 = vadd.f32 %v1497_v36, %v522_v39 }
  0xef   : > { %v672_v40 = vpop.f32.mrf.mxu1  ;;  %v1603_v44 = vpop.f32.mrf.mxu0 }
  0xf0   : > { %v1953_v42 = vpack.c.bf16 %v671_v38, %v671_v38  ;;  %v673_v43 = vadd.f32 %v672_v40, %v553_v35  ;;  %v1957_v47 = vpack.c.bf16 %v523_v41, %v523_v41 }
  0xf1   : > { %v674_v45 = vpop.f32.mrf.mxu1  ;;  %v525_v49 = vpop.f32.mrf.mxu0 }
  0xf2   : > { %v1955_v46 = vpack.c.bf16 %v673_v43, %v673_v43  ;;  %817 = vrot.lane.b32.xlu0 %v1953_v42, %s1768_s29  ;;  %v702_v48 = vsel %vm697_vm1, %v1953_v42, 0 }
  0xf3   : > { %v675_v50 = vpop.f32.mrf.mxu1  ;;  %1606 = vmatpush3.bf16.xpose.msra.mxu0 %v702_v48  ;;  %v1604_v52 = vpop.f32.mrf.mxu0 }
  0xf4   : > { %v770_v51 = vsel %vm768_vm2, %v1955_v46, 0  ;;  %1617 = vmatprep.subr.bf16.mxu0 %v1765_v2 }
  0xf5   : > { %1612 = vmatpush3.bf16.msra.mxu1 %v770_v51 }
  0xf6   : > { %814 = vrot.lane.b32.xlu0 %v1957_v47, %s1768_s29  ;;  %1623 = vmatprep.subr.bf16.mxu1 %v1765_v2 }
  0xfa   : > { %1608 = vmatmul.mubr.msk.bf16.vlgmr.msra.gmra.mxu0 %vm697_vm1, %v1957_v47 }
  0xfb   : > { %1619 = vmatprep.mubr.msk.bf16.mxu0 %vm1767_vm0, %v1765_v2 }
 0x164   : > { %v818_v53 = vpop.permute.xlu0 %817 }
 0x165   : > { %v823_v54 = vsel %vm697_vm1, %v818_v53, 0 }
 0x166   : > { %1618 = vmatpush3.bf16.xpose.msra.mxu0 %v823_v54 }
 0x167   : > { %1629 = vmatprep.subr.bf16.mxu0 %v1765_v2 }
 0x168   : > { %v815_v55 = vpop.permute.xlu0 %814 }
 0x16d   : > { %1620 = vmatmul.mubr.msk.bf16.vlgmr.msra.gmra.mxu0 %vm697_vm1, %v815_v55 }
 0x16e   : > { %1633 = vmatprep.mubr.msk.bf16.mxu0 %vm1767_vm0, %v1765_v2  ;;  %1630 = vmatpush3.bf16.msra.mxu0 %v1733_v22 }
 0x16f   : > { %1631 = vmatprep.subr.bf16.mxu0 %v1765_v2 }
 0x172   : > { %1632 = vmatpush3.bf16.msra.mxu0 %v1734_v23 }
 0x173   : > { %1645 = vmatprep.subr.bf16.mxu0 %v1765_v2 }
 0x1ba   : > { %v738_v56 = vpop.f32.mrf.mxu0 }
 0x1bb   : > { %v744_v58 = vmul.f32 0.17677669, %v738_v56 }
 0x1bc   : > { %v1609_v59 = vpop.f32.mrf.mxu0 }
 0x1bd   : > { %v751_v60 = vadd.f32 %v1982_v57, %v744_v58 }
 0x1be   : > { %v741_v61 = vpop.f32.mrf.mxu0 }
 0x1bf   : > { %v753_v62 = vsel %vm752_vm3, %v751_v60, -inf }
 0x1c0   : > { %754 = vmax.xlane.f32.xlu1 %v753_v62  ;;  %v1610_v63 = vpop.f32.mrf.mxu0 }
 0x22d   : > { %v859_v0 = vpop.f32.mrf.mxu0 }
 0x22e   : > { %v865_v1 = vmul.f32 0.17677669, %v859_v0 }
 0x22f   : > { %v1621_v3 = vpop.f32.mrf.mxu0 }
 0x230   : > { %v866_v4 = vadd.f32 %v1982_v57, %v865_v1 }
 0x231   : > { %v862_v5 = vpop.f32.mrf.mxu0 }
 0x232   : > { %v867_v6 = vsel %vm752_vm3, %v866_v4, -inf }
 0x233   : > { %868 = vmax.xlane.f32.xlu1 %v867_v6  ;;  %v1622_v7 = vpop.f32.mrf.mxu0 }
 0x249   : > { %v755_v8 = vpop.xlane.xlu1 %754 }
 0x24a   : > { %v756_v9 = vsub.f32 %v751_v60, %v755_v8 }
 0x24c   : > { %v757_v10 = vmul.f32 1.442695, %v756_v9  ;;  %v1735_v9 = vld [vmem:[%s2104_s7 + $0x28] sm:$0xff]  }
 0x24e   : > { %1739 = vpow2.f32 %v757_v10 }
 0x25b   : > { %v1740_v11 = vpop.eup %1739 }
 0x25c   : > { %v759_v12 = vsel %vm752_vm3, %v1740_v11, 0.0 }
 0x25d   : > { %760 = vadd.xlane.f32.xlu0 %v759_v12 }
 0x273   : > { %1103 = vrot.lane.b32.xlu0 %v1955_v46, %s1769_s14 }
 0x2bc   : > { %v869_v13 = vpop.xlane.xlu1 %868 }
 0x2bd   : > { %v870_v14 = vsub.f32 %v866_v4, %v869_v13 }
 0x2bf   : > { %v871_v15 = vmul.f32 1.442695, %v870_v14 }
 0x2c1   : > { %1741 = vpow2.f32 %v871_v15 }
 0x2ce   : > { %v1742_v16 = vpop.eup %1741 }
 0x2cf   : > { %v873_v17 = vsel %vm752_vm3, %v1742_v16, 0.0 }
 0x2d0   : > { %874 = vadd.xlane.f32.xlu1 %v873_v17 }
 0x2e1   : > { %880 = vrot.lane.b32.xlu1 %v1955_v46, %s1768_s29 }
 0x2e5   : > { %1041 = vrot.lane.b32.xlu1 %v1953_v42, %s1769_s14 }
 0x2e6   : > { %v761_v18 = vpop.xlane.xlu0 %760 }
 0x2e7   : > { %1743 = vrcp.f32 %v761_v18 }
 0x2e9   : > { %1039 = vrot.lane.b32.xlu1 %v1957_v47, %s1769_s14 }
 0x2ea   : > { %v1104_v33 = vpop.permute.xlu0 %1103 }
 0x2eb   : > { %v1109_v37 = vsel %vm768_vm2, %v1104_v33, 0 }
 0x2f4   : > { %v1744_v19 = vpop.eup %1743 }
 0x2f5   : > { %v763_v20 = vmul.f32 %v1744_v19, %v1740_v11 }
 0x2f7   : > { %v764_v21 = vpack.c.bf16 %v763_v20, %v763_v20 }
 0x2f9   : > { %1614 = vmatmul.mubr.msk.bf16.vlgmr.msra.gmra.mxu1 %vm752_vm3, %v764_v21 }
 0x2fa   : > { %1625 = vmatprep.mubr.msk.bf16.mxu1 %vm1767_vm0, %v1765_v2 }
 0x359   : > { %v875_v24 = vpop.xlane.xlu1 %874 }
 0x35a   : > { %1745 = vrcp.f32 %v875_v24 }
 0x35d   : > { %v881_v25 = vpop.permute.xlu1 %880 }
 0x35e   : > { %v886_v27 = vsel %vm768_vm2, %v881_v25, 0 }
 0x35f   : > { %1624 = vmatpush3.bf16.msra.mxu1 %v886_v27 }
 0x360   : > { %1637 = vmatprep.subr.bf16.mxu1 %v1765_v2 }
 0x361   : > { %v1042_v40 = vpop.permute.xlu1 %1041 }
 0x362   : > { %v1047_v45 = vsel %vm697_vm1, %v1042_v40, 0 }
 0x365   : > { %v1040_v50 = vpop.permute.xlu1 %1039 }
 0x367   : > { %v1746_v28 = vpop.eup %1745 }
 0x368   : > { %v877_v29 = vmul.f32 %v1746_v28, %v1742_v16 }
 0x36a   : > { %v878_v31 = vpack.c.bf16 %v877_v29, %v877_v29 }
 0x36c   : > { %1626 = vmatmul.mubr.msk.bf16.vlgmr.msra.gmra.mxu1 %vm752_vm3, %v878_v31 }
 0x36d   : > { %1638 = vmatpush3.bf16.msra.mxu1 %v1731_v30  ;;  %1641 = vmatprep.mubr.msk.bf16.mxu1 %vm1767_vm0, %v1765_v2 }
 0x36e   : > { %1639 = vmatprep.subr.bf16.mxu1 %v1765_v2 }
 0x371   : > { %1640 = vmatpush3.bf16.msra.mxu1 %v1732_v32 }
 0x372   : > { %1651 = vmatprep.subr.bf16.mxu1 %v1765_v2 }
 0x3b9   : > { %v806_v34 = vpop.f32.mrf.mxu1 }
 0x3ba   : > { %v812_v35 = vpack.c.bf16 %v806_v34, %v806_v34 }
 0x3bb   : > { %v1615_v36 = vpop.f32.mrf.mxu1 }
 0x3bc   : > { %1642 = vmatmul.mubr.msk.bf16.vlgmr.msra.gmra.mxu1 %vm697_vm1, %v812_v35 }
 0x3bd   : > { %1652 = vmatpush3.bf16.msra.mxu1 %v1109_v37  ;;  %v809_v38 = vpop.f32.mrf.mxu1  ;;  %1653 = vmatprep.mubr.msk.bf16.mxu1 %vm1767_vm0, %v1765_v2 }
 0x3be   : > { %1665 = vmatprep.subr.bf16.mxu1 %v1765_v2  ;;  %v1737_v38 = vld [vmem:[%s2104_s7 + $0x38] sm:$0xff]  }
 0x3bf   : > { %v1616_v39 = vpop.f32.mrf.mxu1 }
 0x42c   : > { %v922_v41 = vpop.f32.mrf.mxu1 }
 0x42d   : > { %v928_v43 = vpack.c.bf16 %v922_v41, %v922_v41 }
 0x42e   : > { %v1627_v44 = vpop.f32.mrf.mxu1 }
 0x42f   : > { %1634 = vmatmul.mubr.msk.bf16.vlgmr.msra.gmra.mxu0 %vm697_vm1, %v928_v43 }
 0x430   : > { %1646 = vmatpush3.bf16.xpose.msra.mxu0 %v1047_v45  ;;  %v925_v48 = vpop.f32.mrf.mxu1  ;;  %1647 = vmatprep.mubr.msk.bf16.mxu0 %vm1767_vm0, %v1765_v2 }
 0x431   : > { %1657 = vmatprep.subr.bf16.mxu0 %v1765_v2  ;;  %v1738_v48 = vld [vmem:[%s2104_s7 + $0x30] sm:$0xff]  }
 0x432   : > { %v1628_v49 = vpop.f32.mrf.mxu1 }
 0x437   : > { %1648 = vmatmul.mubr.msk.bf16.vlgmr.msra.gmra.mxu0 %vm697_vm1, %v1040_v50 }
 0x438   : > { %1661 = vmatprep.mubr.msk.bf16.mxu0 %vm1767_vm0, %v1765_v2  ;;  %1658 = vmatpush3.bf16.msra.mxu0 %v1735_v9 }
 0x439   : > { %1659 = vmatprep.subr.bf16.mxu0 %v1765_v2 }
 0x47c   : > { %v2032_v51 = vpop.f32.mrf.mxu1 }
 0x47e   : > { %v1643_v52 = vpop.f32.mrf.mxu1 }
 0x480   : > { %v1036_v53 = vpop.f32.mrf.mxu1 }
 0x482   : > { %v1644_v54 = vpop.f32.mrf.mxu1 }
 0x4ef   : > { %v2034_v55 = vpop.f32.mrf.mxu0 }
 0x4f0   : > { %v1034_v34 = vadd.f32 %v2032_v51, %v2034_v55 }
 0x4f1   : > { %v1635_v56 = vpop.f32.mrf.mxu0 }
 0x4f2   : > { %v1543_v56 = vld [vmem:[%s2105_s8] ss:$0 sm:$0xff] }
 0x4f3   : > { %v981_v58 = vpop.f32.mrf.mxu0 }
 0x4f5   : > { %v1636_v59 = vpop.f32.mrf.mxu0 }
 0x4f7   : > { %v1083_v60 = vpop.f32.mrf.mxu0 }
 0x4f8   : > { %v1089_v61 = vmul.f32 0.17677669, %v1083_v60 }
 0x4f9   : > { %v1649_v62 = vpop.f32.mrf.mxu0 }
 0x4fa   : > { %v1090_v63 = vadd.f32 %v1982_v57, %v1089_v61 }
 0x4fb   : > { %v1086_v0 = vpop.f32.mrf.mxu0 }
 0x4fc   : > { %v1091_v1 = vsel %vm752_vm3, %v1090_v63, -inf }
 0x4fd   : > { %1092 = vmax.xlane.f32.xlu1 %v1091_v1  ;;  %v1650_v3 = vpop.f32.mrf.mxu0 }
 0x586   : > { %v1093_v4 = vpop.xlane.xlu1 %1092 }
 0x587   : > { %v1094_v5 = vsub.f32 %v1090_v63, %v1093_v4 }
 0x589   : > { %v1095_v6 = vmul.f32 1.442695, %v1094_v5 }
 0x58b   : > { %1747 = vpow2.f32 %v1095_v6 }
 0x598   : > { %v1748_v7 = vpop.eup %1747 }
 0x599   : > { %v1097_v8 = vsel %vm752_vm3, %v1748_v7, 0.0 }
 0x59a   : > { %1098 = vadd.xlane.f32.xlu0 %v1097_v8  ;;  %v1545_v8 = vld [vmem:[%s2107_s10] ss:$0 sm:$0xff] }
 0x5b0   : > { %1210 = vrot.lane.b32.xlu0 %v1953_v42, %s1770_s26 }
 0x5b4   : > { %1208 = vrot.lane.b32.xlu0 %v1957_v47, %s1770_s26  ;;  %v1736_v47 = vld [vmem:[%s2104_s7 + $0x20] sm:$0xff]  }
 0x5b5   : > { %1660 = vmatpush3.bf16.msra.mxu0 %v1736_v47 }
 0x5b6   : > { %1671 = vmatprep.subr.bf16.mxu0 %v1765_v2 }
 0x623   : > { %v1099_v10 = vpop.xlane.xlu0 %1098 }
 0x624   : > { %1749 = vrcp.f32 %v1099_v10 }
 0x627   : > { %v1211_v13 = vpop.permute.xlu0 %1210 }
 0x628   : > { %v1216_v15 = vsel %vm697_vm1, %v1211_v13, 0 }
 0x62b   : > { %v1209_v42 = vpop.permute.xlu0 %1208 }
 0x631   : > { %v1750_v11 = vpop.eup %1749 }
 0x632   : > { %v1101_v12 = vmul.f32 %v1750_v11, %v1748_v7  ;;  %v1544_v7 = vld [vmem:[%s2106_s9] ss:$0 sm:$0xff] }
 0x634   : > { %v1102_v14 = vpack.c.bf16 %v1101_v12, %v1101_v12 }
 0x636   : > { %1654 = vmatmul.mubr.msk.bf16.vlgmr.msra.gmra.mxu1 %vm752_vm3, %v1102_v14 }
 0x637   : > { %1666 = vmatpush3.bf16.xpose.msra.mxu1 %v1216_v15  ;;  %1667 = vmatprep.mubr.msk.bf16.mxu1 %vm1767_vm0, %v1765_v2 }
 0x638   : > { %1677 = vmatprep.subr.bf16.mxu1 %v1765_v2 }
 0x63e   : > { %1668 = vmatmul.mubr.msk.bf16.vlgmr.msra.gmra.mxu1 %vm697_vm1, %v1209_v42 }
 0x63f   : > { %1681 = vmatprep.mubr.msk.bf16.mxu1 %vm1767_vm0, %v1765_v2  ;;  %1678 = vmatpush3.bf16.msra.mxu1 %v1737_v38 }
 0x640   : > { %1679 = vmatprep.subr.bf16.mxu1 %v1765_v2 }
 0x643   : > { %1680 = vmatpush3.bf16.msra.mxu1 %v1738_v48 }
 0x6f6   : > { %v1145_v16 = vpop.f32.mrf.mxu1 }
 0x6f7   : > { %v1151_v17 = vpack.c.bf16 %v1145_v16, %v1145_v16 }
 0x6f8   : > { %v1655_v18 = vpop.f32.mrf.mxu1 }
 0x6f9   : > { %1662 = vmatmul.mubr.msk.bf16.vlgmr.msra.gmra.mxu0 %vm697_vm1, %v1151_v17 }
 0x6fa   : > { %v1148_v19 = vpop.f32.mrf.mxu1  ;;  %1673 = vmatprep.mubr.msk.bf16.mxu0 %vm1767_vm0, %v1765_v2 }
 0x6fc   : > { %v1656_v20 = vpop.f32.mrf.mxu1 }
 0x6fe   : > { %v1252_v21 = vpop.f32.mrf.mxu1 }
 0x6ff   : > { %v1258_v22 = vmul.f32 0.17677669, %v1252_v21 }
 0x700   : > { %v1669_v23 = vpop.f32.mrf.mxu1 }
 0x701   : > { %v1259_v24 = vadd.f32 %v1982_v57, %v1258_v22 }
 0x702   : > { %v1255_v25 = vpop.f32.mrf.mxu1 }
 0x703   : > { %v1260_v27 = vsel %vm752_vm3, %v1259_v24, -inf }
 0x704   : > { %1261 = vmax.xlane.f32.xlu0 %v1260_v27  ;;  %v1670_v28 = vpop.f32.mrf.mxu1 }
 0x78d   : > { %v1262_v29 = vpop.xlane.xlu0 %1261 }
 0x78e   : > { %v1263_v30 = vsub.f32 %v1259_v24, %v1262_v29 }
 0x790   : > { %v1264_v31 = vmul.f32 1.442695, %v1263_v30 }
 0x792   : > { %1751 = vpow2.f32 %v1264_v31 }
 0x79f   : > { %v1752_v32 = vpop.eup %1751 }
 0x7a0   : > { %v1266_v33 = vsel %vm752_vm3, %v1752_v32, 0.0 }
 0x7a1   : > { %1267 = vadd.xlane.f32.xlu1 %v1266_v33 }
 0x7b2   : > { %1272 = vrot.lane.b32.xlu1 %v1955_v46, %s1770_s26 }
 0x7b9   : > { %v1201_v57 = vpop.f32.mrf.mxu0 }
 0x7ba   : > { %v1207_v35 = vadd.f32 %v1201_v57, %v1034_v34 }
 0x7bb   : > { %v1663_v36 = vpop.f32.mrf.mxu0 }
 0x7bd   : > { %v1204_v37 = vpop.f32.mrf.mxu0 }
 0x7bf   : > { %v1664_v39 = vpop.f32.mrf.mxu0 }
 0x82a   : > { %v1268_v40 = vpop.xlane.xlu1 %1267 }
 0x82b   : > { %1753 = vrcp.f32 %v1268_v40 }
 0x82e   : > { %v1273_v41 = vpop.permute.xlu1 %1272 }
 0x82f   : > { %v1278_v46 = vsel %vm768_vm2, %v1273_v41, 0 }
 0x830   : > { %1672 = vmatpush3.bf16.msra.mxu0 %v1278_v46 }
 0x838   : > { %v1754_v43 = vpop.eup %1753 }
 0x839   : > { %v1270_v44 = vmul.f32 %v1754_v43, %v1752_v32 }
 0x83b   : > { %v1271_v45 = vpack.c.bf16 %v1270_v44, %v1270_v44 }
 0x83d   : > { %1674 = vmatmul.mubr.msk.bf16.vlgmr.msra.gmra.mxu0 %vm752_vm3, %v1271_v45 }
 0x8fd   : > { %v1314_v49 = vpop.f32.mrf.mxu0 }
 0x8fe   : > { %v1320_v50 = vpack.c.bf16 %v1314_v49, %v1314_v49 }
 0x8ff   : > { %v1675_v51 = vpop.f32.mrf.mxu0 }
 0x900   : > { %1682 = vmatmul.mubr.msk.bf16.vlgmr.msra.gmra.mxu1 %vm697_vm1, %v1320_v50 }
 0x901   : > { %v1317_v2 = vpop.f32.mrf.mxu0 }
 0x903   : > { %v1676_v52 = vpop.f32.mrf.mxu0 }
 0x9c0   : > { %v1370_v53 = vpop.f32.mrf.mxu1 }
 0x9c1   : > { %v1376_v54 = vadd.f32 %v1370_v53, %v1207_v35 }
 0x9c2   : > { %v1683_v55 = vpop.f32.mrf.mxu1 }
 0x9c3   : > { %v1377_v58 = vadd.f32 %v1376_v54, %v1936_v26 }
 0x9c4   : > { %v1373_v59 = vpop.f32.mrf.mxu1 }
 0x9c5   : > { %v1385_v60 = vadd.f32 %v1543_v56, %v1377_v58 }
 0x9c6   : > { %v1684_v61 = vpop.f32.mrf.mxu1 }
 0x9c7   : > { %1388 = vadd.xlane.f32.xlu1 %v1385_v60 }
 0xa50   : > { %v1389_v62 = vpop.xlane.xlu1 %1388 }
 0xa51   : > { %v1391_v63 = vmul.f32 0.0078125, %v1389_v62 }
 0xa53   : > { %v1392_v0 = vsub.f32 %v1385_v60, %v1391_v63 }
 0xa55   : > { %v1393_v1 = vmul.f32 %v1392_v0, %v1392_v0 }
 0xa57   : > { %1394 = vadd.xlane.f32.xlu0 %v1393_v1 }
 0xae0   : > { %v1395_v3 = vpop.xlane.xlu0 %1394 }
 0xae1   : > { %v1396_v4 = vmul.f32 0.0078125, %v1395_v3 }
 0xae3   : > { %v1397_v5 = vadd.f32 1e-05, %v1396_v4 }
 0xae5   : > { %1755 = vrsqrt.f32 %v1397_v5 }
 0xaf2   : > { %v1756_v6 = vpop.eup %1755 }
 0xaf3   : > { %v1399_v26 = vmul.f32 %v1756_v6, %v1392_v0 }
 0xaf5   : > { %v1406_v9 = vmul.f32 %v1544_v7, %v1399_v26 }
 0xaf7   : > { %v1413_v10 = vadd.f32 %v1545_v8, %v1406_v9 }
 0xaf9   : > { %1414 = vst [vmem:[%s412_s27] sm:$0xff] %v1413_v10 }
 0xafa PF: > { %s21_s17 = sadd.s32 1, %s1763_s17  }
 0xafb   : > { %p18_p4 = scmp.ge.s32.totalorder %s21_s17, 4  }
 0xafd   :  { %20 = sbr.rel (!%p18_p4) target bundleno = 1 (0x1), region = 100 }

// kernel: tr_decoder_forward.6
= control target key start
LH: loop header
LB: loop body
LE: loop exit
PB: predicated region body
PF: predicated region fallthrough
CT: control target
= control target key end

     0   :  { %s1671_s27 = smov 0   ;;  %s1935_s0 = inlined_call_operand.vmem [shape: f32[2,8,128], index: 0, kind: input, shape index: {}]   ;;  %s1936_s1 = inlined_call_operand.vmem [shape: bf16[128,384], index: 1, kind: input, shape index: {}]   ;;  %s1937_s2 = inlined_call_operand.vmem [shape: f32[1,384], index: 2, kind: input, shape index: {}]   ;;  %s1938_s3 = inlined_call_operand.vmem [shape: f32[8,8], index: 3, kind: input, shape index: {}]   ;;  %s1939_s4 = inlined_call_operand.vmem [shape: bf16[128,128], index: 4, kind: input, shape index: {}]   ;;  %s1940_s5 = inlined_call_operand.vmem [shape: f32[1,128], index: 5, kind: input, shape index: {}]   ;;  %s1941_s6 = inlined_call_operand.vmem [shape: f32[1,128], index: 6, kind: input, shape index: {}]   ;;  %s1942_s7 = inlined_call_operand.vmem [shape: f32[1,128], index: 7, kind: input, shape index: {}]   ;;  %s1943_s8 = inlined_call_operand.vmem [shape: f32[2,8,128], index: 8, kind: output, shape index: {}]  }
   0x1 LB: > { %s1347_s28 = sadd.s32 4294967295, %s1618_s27   ;;  %p1351_p0 = scmp.ge.s32.totalorder %s1618_s27, 1  ;;  %s1618_s27 = sphi %s1671_s27, %s18_s27  }
   0x2   : > { %p261_p1 = scmp.lt.s32.totalorder %s1618_s27, 3 }
   0x4   : > { %p262_p2 = pnand %p1351_p0, %p261_p1 }
   0x5   : > { %p293_p3 = scmp.lt.s32.totalorder (!%p262_p2), %s1347_s28, 1  ;;  %s1623_s26 = smov (!%p262_p2), 96  }
   0x6   : > { %265 = sbr.rel (%p262_p2) target bundleno = 2811 (0xafb), region = 52  ;;  %s1624_s29 = smov (!%p262_p2), 64  }
   0x7   : > { %s1625_s15 = smov (!%p262_p2), 32  }
   0xb   : > { %v1554_v0 = vld [vmem:[%s1936_s1 + $0xac] ss:$12 sps:$4 sm:$0xff]   ;;  %v1556_v1 = vld [vmem:[%s1936_s1 + $0xa8] ss:$12 sps:$4 sm:$0xff]   ;;  %v1620_v2 = vmov 0   ;;  %s1945_s28 = smov (!%p293_p3, %s1347_s28), 1  ;;  %v338_v20 = vlaneseq }
   0xc   : > { %513 = vmatprep.mubr.bf16.mxu0 %v1620_v2  ;;  %481 = vmatprep.subr.bf16.mxu0 %v1554_v0  ;;  %v1557_v3 = vld [vmem:[%s1936_s1 + $0x94] ss:$12 sps:$4 sm:$0xff]   ;;  %v1559_v4 = vld [vmem:[%s1936_s1 + $0x90] ss:$12 sps:$4 sm:$0xff]   ;;  %v1562_v6 = vld [vmem:[%s1936_s1 + $0x78] ss:$12 sps:$4 sm:$0xff]  }
   0xd   : > { %482 = vmatpush1.bf16.msra.mxu0 %v1556_v1  ;;  %v1560_v5 = vld [vmem:[%s1936_s1 + $0x7c] ss:$12 sps:$4 sm:$0xff]   ;;  %v1563_v7 = vld [vmem:[%s1936_s1 + $0x64] ss:$12 sps:$4 sm:$0xff]   ;;  %v1565_v8 = vld [vmem:[%s1936_s1 + $0x60] ss:$12 sps:$4 sm:$0xff]  }
   0xe   : > { %483 = vmatprep.subr.bf16.mxu0 %v1557_v3  ;;  %s1352_s23 = sshll.u32 %s1945_s28, 3  ;;  %v1566_v9 = vld [vmem:[%s1936_s1 + $0x4c] ss:$12 sps:$4 sm:$0xff]   ;;  %v1568_v10 = vld [vmem:[%s1936_s1 + $0x48] ss:$12 sps:$4 sm:$0xff]   ;;  %v1621_v19 = vmov 0.0  }
   0xf   : > { %v1569_v11 = vld [vmem:[%s1936_s1 + $0x34] ss:$12 sps:$4 sm:$0xff]   ;;  %v1571_v12 = vld [vmem:[%s1936_s1 + $0x30] ss:$12 sps:$4 sm:$0xff]   ;;  %v1574_v14 = vld [vmem:[%s1936_s1 + $0x18] ss:$12 sps:$4 sm:$0xff]   ;;  %s296_s20 = scalar_lea.vmem %s1935_s0, %s1352_s23  ;;  %1440 = vmatprep.subr.bf16.mxu1 %v1621_v19  ;;  %s300_s13 = scalar_lea.vmem %s1943_s8, %s1352_s23 }
  0x10   : > { %v1572_v13 = vld [vmem:[%s1936_s1 + $0x1c] ss:$12 sps:$4 sm:$0xff]   ;;  %v1575_v15 = vld [vmem:[%s1936_s1 + $0x4] ss:$12 sps:$4 sm:$0xff]   ;;  %v1577_v16 = vld [vmem:[%s1936_s1] ss:$12 sps:$4 sm:$0xff]  }
  0x11   : > { %484 = vmatpush1.bf16.msra.mxu0 %v1559_v4  ;;  %v1735_v17 = vld [vmem:[%s296_s20] sm:$0xff]  ;;  %vm1622_vm0 = vmmov 0   ;;  %v1745_v21 = vshrl.u32 %v338_v20, 7  ;;  %vm582_vm1 = vcmask 261120   ;;  %v1578_v36 = vld [vmem:[%s1936_s1 + $0xb0] ss:$12 sps:$4 sm:$0xff]  }
  0x12   : > { %485 = vmatprep.subr.bf16.mxu0 %v1560_v5  ;;  %v303_v18 = vpack.c.bf16 %v1735_v17, %v1735_v17  ;;  %1456 = vmatprep.mubr.msk.bf16.mxu1 %vm1622_vm0, %v1621_v19  ;;  %v1752_v24 = vld [vmem:[%s1937_s2] sm:$0x7]  ;;  %v1579_v37 = vld [vmem:[%s1936_s1 + $0x98] ss:$12 sps:$4 sm:$0xff]   ;;  %v1581_v39 = vld [vmem:[%s1936_s1 + $0x68] ss:$12 sps:$4 sm:$0xff]  }
  0x13   : > { %v344_v22 = vsub.s32 1, %v1745_v21  ;;  %v340_v23 = vsub.s32 0, %v1745_v21  ;;  %1441 = vmatpush3.bf16.msra.mxu1 %v1578_v36  ;;  %v1580_v38 = vld [vmem:[%s1936_s1 + $0x80] ss:$12 sps:$4 sm:$0xff]   ;;  %v1582_v40 = vld [vmem:[%s1936_s1 + $0x50] ss:$12 sps:$4 sm:$0xff]  }
  0x14   : > { %1442 = vmatprep.subr.bf16.mxu1 %v1621_v19  ;;  %v1583_v41 = vld [vmem:[%s1936_s1 + $0x38] ss:$12 sps:$4 sm:$0xff]   ;;  %v1584_v42 = vld [vmem:[%s1936_s1 + $0x20] ss:$12 sps:$4 sm:$0xff]   ;;  %v1585_v43 = vld [vmem:[%s1936_s1 + $0x8] ss:$12 sps:$4 sm:$0xff]  }
  0x15   : > { %486 = vmatpush1.bf16.msra.mxu0 %v1562_v6  ;;  %v345_v25 = vrot.slane %v1752_v24, %v344_v22  ;;  %v341_v27 = vrot.slane %v1752_v24, %v340_v23  ;;  %v1813_v48 = vld [vmem:[%s1938_s3] sm:$0xff]  ;;  %vm631_vm2 = vcmask 64512   ;;  %vm647_vm3 = vcmask 1043456   ;;  %v1588_v23 = vld [vmem:[%s1939_s4 + $0x18] sm:$0xff]  }
  0x16   : > { %487 = vmatprep.subr.bf16.mxu0 %v1563_v7  ;;  %v348_v7 = vsub.s32 2, %v1745_v21 }
  0x17   : > { %1443 = vmatpush3.bf16.msra.mxu1 %v1579_v37 }
  0x18   : > { %1444 = vmatprep.subr.bf16.mxu1 %v1621_v19 }
  0x19   : > { %488 = vmatpush1.bf16.msra.mxu0 %v1565_v8  ;;  %v349_v8 = vrot.slane %v1752_v24, %v348_v7  ;;  %v1589_v24 = vld [vmem:[%s1939_s4 + $0x10] sm:$0xff]   ;;  %v1590_v7 = vld [vmem:[%s1939_s4 + $0x28] sm:$0xff]  }
  0x1a   : > { %489 = vmatprep.subr.bf16.mxu0 %v1566_v9 }
  0x1b   : > { %1445 = vmatpush3.bf16.msra.mxu1 %v1580_v38 }
  0x1c   : > { %1446 = vmatprep.subr.bf16.mxu1 %v1621_v19 }
  0x1d   : > { %490 = vmatpush1.bf16.msra.mxu0 %v1568_v10 }
  0x1e   : > { %491 = vmatprep.subr.bf16.mxu0 %v1569_v11 }
  0x1f   : > { %1447 = vmatpush3.bf16.msra.mxu1 %v1581_v39 }
  0x20   : > { %1448 = vmatprep.subr.bf16.mxu1 %v1621_v19 }
  0x21   : > { %492 = vmatpush1.bf16.msra.mxu0 %v1571_v12 }
  0x22   : > { %493 = vmatprep.subr.bf16.mxu0 %v1572_v13 }
  0x23   : > { %1449 = vmatpush3.bf16.msra.mxu1 %v1582_v40 }
  0x24   : > { %1450 = vmatprep.subr.bf16.mxu1 %v1621_v19 }
  0x25   : > { %494 = vmatpush1.bf16.msra.mxu0 %v1574_v14 }
  0x26   : > { %495 = vmatprep.subr.bf16.mxu0 %v1575_v15 }
  0x27   : > { %1451 = vmatpush3.bf16.msra.mxu1 %v1583_v41 }
  0x28   : > { %1452 = vmatprep.subr.bf16.mxu1 %v1621_v19 }
  0x29   : > { %496 = vmatpush1.bf16.msra.mxu0 %v1577_v16 }
  0x2a   : > { %1460 = vmatprep.subr.bf16.mxu0 %v1621_v19 }
  0x2b   : > { %1453 = vmatpush3.bf16.msra.mxu1 %v1584_v42 }
  0x2c   : > { %514 = vmatmul.mubr.bf16.vlgmr.msra.gmra.mxu0 %v303_v18  ;;  %1454 = vmatprep.subr.bf16.mxu1 %v1621_v19 }
  0x2d   : > { %1462 = vmatprep.mubr.msk.bf16.mxu0 %vm1622_vm0, %v1621_v19 }
  0x2f   : > { %1455 = vmatpush3.bf16.msra.mxu1 %v1585_v43 }
  0x30   : > { %1466 = vmatprep.subr.bf16.mxu1 %v1621_v19 }
  0x32   : > { %1457 = vmatmul.mubr.bf16.vlgmr.msra.gmra.mxu1 %v303_v18 }
  0x33   : > { %1468 = vmatprep.mubr.msk.bf16.mxu1 %vm1622_vm0, %v1621_v19 }
  0xec   : > { %v515_v26 = vpop.f32.mrf.mxu0 }
  0xed   : > { %v516_v31 = vadd.f32 %v515_v26, %v341_v27 }
  0xee   : > { %v517_v28 = vpop.f32.mrf.mxu0 }
  0xef   : > { %v518_v29 = vadd.f32 %v517_v28, %v345_v25  ;;  %v1762_v35 = vpack.c.bf16 %v516_v31, %v516_v31 }
  0xf0   : > { %v519_v30 = vpop.f32.mrf.mxu0 }
  0xf1   : > { %v1756_v32 = vpack.c.bf16 %v518_v29, %v518_v29  ;;  %v1586_v30 = vld [vmem:[%s1939_s4 + $0x8] sm:$0xff]  }
  0xf2   : > { %v520_v33 = vpop.f32.mrf.mxu0  ;;  %v556_v1 = vpop.f32.mrf.mxu1 }
  0xf3   : > { %696 = vrot.lane.b32.xlu0 %v1756_v32, %s1623_s26  ;;  %v587_v34 = vsel %vm582_vm1, %v1756_v32, 0  ;;  %v557_v9 = vadd.f32 %v556_v1, %v349_v8  ;;  %v1587_v33 = vld [vmem:[%s1939_s4] sm:$0xff]  }
  0xf4   : > { %1461 = vmatpush3.bf16.xpose.msra.mxu0 %v587_v34  ;;  %v1458_v2 = vpop.f32.mrf.mxu1 }
  0xf5   : > { %1472 = vmatprep.subr.bf16.mxu0 %v1621_v19  ;;  %v1822_v10 = vpack.c.bf16 %v557_v9, %v557_v9 }
  0xf6   : > { %v559_v3 = vpop.f32.mrf.mxu1 }
  0xf7   : > { %693 = vrot.lane.b32.xlu0 %v1762_v35, %s1623_s26  ;;  %v649_v11 = vsel %vm647_vm3, %v1822_v10, 0 }
  0xf8   : > { %v1459_v4 = vpop.f32.mrf.mxu1  ;;  %1467 = vmatpush3.bf16.msra.mxu1 %v649_v11 }
  0xf9   : > { %1478 = vmatprep.subr.bf16.mxu1 %v1621_v19 }
  0xfb   : > { %1463 = vmatmul.mubr.msk.bf16.vlgmr.msra.gmra.mxu0 %vm582_vm1, %v1762_v35 }
  0xfc   : > { %1474 = vmatprep.mubr.msk.bf16.mxu0 %vm1622_vm0, %v1621_v19 }
 0x165   : > { %v697_v44 = vpop.permute.xlu0 %696 }
 0x166   : > { %v702_v45 = vsel %vm582_vm1, %v697_v44, 0 }
 0x167   : > { %1473 = vmatpush3.bf16.xpose.msra.mxu0 %v702_v45 }
 0x168   : > { %1484 = vmatprep.subr.bf16.mxu0 %v1621_v19 }
 0x169   : > { %v694_v46 = vpop.permute.xlu0 %693 }
 0x16e   : > { %1475 = vmatmul.mubr.msk.bf16.vlgmr.msra.gmra.mxu0 %vm582_vm1, %v694_v46 }
 0x16f   : > { %1488 = vmatprep.mubr.msk.bf16.mxu0 %vm1622_vm0, %v1621_v19  ;;  %1485 = vmatpush3.bf16.msra.mxu0 %v1588_v23 }
 0x170   : > { %1486 = vmatprep.subr.bf16.mxu0 %v1621_v19 }
 0x173   : > { %1487 = vmatpush3.bf16.msra.mxu0 %v1589_v24 }
 0x174   : > { %1500 = vmatprep.subr.bf16.mxu0 %v1621_v19 }
 0x1bb   : > { %v623_v47 = vpop.f32.mrf.mxu0 }
 0x1bc   : > { %v629_v49 = vmul.f32 0.17677669, %v623_v47 }
 0x1bd   : > { %v1464_v50 = vpop.f32.mrf.mxu0 }
 0x1be   : > { %v630_v51 = vadd.f32 %v629_v49, %v1813_v48 }
 0x1bf   : > { %v626_v52 = vpop.f32.mrf.mxu0 }
 0x1c0   : > { %v632_v53 = vsel %vm631_vm2, %v630_v51, -inf }
 0x1c1   : > { %633 = vmax.xlane.f32.xlu1 %v632_v53  ;;  %v1465_v54 = vpop.f32.mrf.mxu0 }
 0x22e   : > { %v738_v55 = vpop.f32.mrf.mxu0 }
 0x22f   : > { %v744_v56 = vmul.f32 0.17677669, %v738_v55 }
 0x230   : > { %v1476_v57 = vpop.f32.mrf.mxu0 }
 0x231   : > { %v745_v58 = vadd.f32 %v744_v56, %v1813_v48 }
 0x232   : > { %v741_v59 = vpop.f32.mrf.mxu0 }
 0x233   : > { %v746_v60 = vsel %vm631_vm2, %v745_v58, -inf }
 0x234   : > { %747 = vmax.xlane.f32.xlu1 %v746_v60  ;;  %v1477_v61 = vpop.f32.mrf.mxu0 }
 0x24a   : > { %v634_v62 = vpop.xlane.xlu1 %633 }
 0x24b   : > { %v635_v63 = vsub.f32 %v630_v51, %v634_v62 }
 0x24d   : > { %v636_v0 = vmul.f32 1.442695, %v635_v63 }
 0x24f   : > { %1594 = vpow2.f32 %v636_v0 }
 0x25c   : > { %v1595_v5 = vpop.eup %1594 }
 0x25d   : > { %v638_v6 = vsel %vm631_vm2, %v1595_v5, 0.0 }
 0x25e   : > { %639 = vadd.xlane.f32.xlu0 %v638_v6 }
 0x274   : > { %982 = vrot.lane.b32.xlu0 %v1822_v10, %s1624_s29 }
 0x2bd   : > { %v748_v12 = vpop.xlane.xlu1 %747 }
 0x2be   : > { %v749_v13 = vsub.f32 %v745_v58, %v748_v12 }
 0x2c0   : > { %v750_v14 = vmul.f32 1.442695, %v749_v13 }
 0x2c2   : > { %1596 = vpow2.f32 %v750_v14 }
 0x2cf   : > { %v1597_v15 = vpop.eup %1596 }
 0x2d0   : > { %v752_v16 = vsel %vm631_vm2, %v1597_v15, 0.0 }
 0x2d1   : > { %753 = vadd.xlane.f32.xlu1 %v752_v16 }
 0x2e2   : > { %759 = vrot.lane.b32.xlu1 %v1822_v10, %s1623_s26 }
 0x2e6   : > { %920 = vrot.lane.b32.xlu1 %v1756_v32, %s1624_s29 }
 0x2e7   : > { %v640_v18 = vpop.xlane.xlu0 %639 }
 0x2e8   : > { %1598 = vrcp.f32 %v640_v18 }
 0x2ea   : > { %918 = vrot.lane.b32.xlu1 %v1762_v35, %s1624_s29 }
 0x2eb   : > { %v983_v34 = vpop.permute.xlu0 %982 }
 0x2ec   : > { %v988_v39 = vsel %vm647_vm3, %v983_v34, 0 }
 0x2f5   : > { %v1599_v20 = vpop.eup %1598 }
 0x2f6   : > { %v642_v21 = vmul.f32 %v1599_v20, %v1595_v5 }
 0x2f8   : > { %v643_v22 = vpack.c.bf16 %v642_v21, %v642_v21 }
 0x2fa   : > { %1469 = vmatmul.mubr.msk.bf16.vlgmr.msra.gmra.mxu1 %vm631_vm2, %v643_v22 }
 0x2fb   : > { %1480 = vmatprep.mubr.msk.bf16.mxu1 %vm1622_vm0, %v1621_v19 }
 0x35a   : > { %v754_v25 = vpop.xlane.xlu1 %753 }
 0x35b   : > { %1600 = vrcp.f32 %v754_v25 }
 0x35e   : > { %v760_v26 = vpop.permute.xlu1 %759 }
 0x35f   : > { %v765_v27 = vsel %vm647_vm3, %v760_v26, 0 }
 0x360   : > { %1479 = vmatpush3.bf16.msra.mxu1 %v765_v27 }
 0x361   : > { %1492 = vmatprep.subr.bf16.mxu1 %v1621_v19 }
 0x362   : > { %v921_v42 = vpop.permute.xlu1 %920 }
 0x363   : > { %v926_v46 = vsel %vm582_vm1, %v921_v42, 0 }
 0x366   : > { %v919_v50 = vpop.permute.xlu1 %918 }
 0x368   : > { %v1601_v28 = vpop.eup %1600 }
 0x369   : > { %v756_v29 = vmul.f32 %v1601_v28, %v1597_v15 }
 0x36b   : > { %v757_v31 = vpack.c.bf16 %v756_v29, %v756_v29 }
 0x36d   : > { %1481 = vmatmul.mubr.msk.bf16.vlgmr.msra.gmra.mxu1 %vm631_vm2, %v757_v31 }
 0x36e   : > { %1493 = vmatpush3.bf16.msra.mxu1 %v1586_v30  ;;  %1496 = vmatprep.mubr.msk.bf16.mxu1 %vm1622_vm0, %v1621_v19 }
 0x36f   : > { %1494 = vmatprep.subr.bf16.mxu1 %v1621_v19 }
 0x372   : > { %1495 = vmatpush3.bf16.msra.mxu1 %v1587_v33 }
 0x373   : > { %1506 = vmatprep.subr.bf16.mxu1 %v1621_v19 }
 0x3ba   : > { %v685_v36 = vpop.f32.mrf.mxu1 }
 0x3bb   : > { %v691_v37 = vpack.c.bf16 %v685_v36, %v685_v36 }
 0x3bc   : > { %v1470_v38 = vpop.f32.mrf.mxu1 }
 0x3bd   : > { %1497 = vmatmul.mubr.msk.bf16.vlgmr.msra.gmra.mxu1 %vm582_vm1, %v691_v37 }
 0x3be   : > { %1507 = vmatpush3.bf16.msra.mxu1 %v988_v39  ;;  %v688_v40 = vpop.f32.mrf.mxu1  ;;  %1508 = vmatprep.mubr.msk.bf16.mxu1 %vm1622_vm0, %v1621_v19 }
 0x3bf   : > { %1520 = vmatprep.subr.bf16.mxu1 %v1621_v19  ;;  %v1592_v40 = vld [vmem:[%s1939_s4 + $0x38] sm:$0xff]  }
 0x3c0   : > { %v1471_v41 = vpop.f32.mrf.mxu1 }
 0x42d   : > { %v801_v43 = vpop.f32.mrf.mxu1 }
 0x42e   : > { %v807_v44 = vpack.c.bf16 %v801_v43, %v801_v43 }
 0x42f   : > { %v1482_v45 = vpop.f32.mrf.mxu1 }
 0x430   : > { %1489 = vmatmul.mubr.msk.bf16.vlgmr.msra.gmra.mxu0 %vm582_vm1, %v807_v44 }
 0x431   : > { %1501 = vmatpush3.bf16.xpose.msra.mxu0 %v926_v46  ;;  %v804_v47 = vpop.f32.mrf.mxu1  ;;  %1502 = vmatprep.mubr.msk.bf16.mxu0 %vm1622_vm0, %v1621_v19 }
 0x432   : > { %1512 = vmatprep.subr.bf16.mxu0 %v1621_v19  ;;  %v1593_v47 = vld [vmem:[%s1939_s4 + $0x30] sm:$0xff]  }
 0x433   : > { %v1483_v49 = vpop.f32.mrf.mxu1 }
 0x438   : > { %1503 = vmatmul.mubr.msk.bf16.vlgmr.msra.gmra.mxu0 %vm582_vm1, %v919_v50 }
 0x439   : > { %1516 = vmatprep.mubr.msk.bf16.mxu0 %vm1622_vm0, %v1621_v19  ;;  %1513 = vmatpush3.bf16.msra.mxu0 %v1590_v7 }
 0x43a   : > { %1514 = vmatprep.subr.bf16.mxu0 %v1621_v19 }
 0x47d   : > { %v1870_v51 = vpop.f32.mrf.mxu1 }
 0x47f   : > { %v1498_v52 = vpop.f32.mrf.mxu1 }
 0x481   : > { %v915_v53 = vpop.f32.mrf.mxu1 }
 0x483   : > { %v1499_v54 = vpop.f32.mrf.mxu1 }
 0x4f0   : > { %v1872_v55 = vpop.f32.mrf.mxu0 }
 0x4f1   : > { %v913_v36 = vadd.f32 %v1870_v51, %v1872_v55 }
 0x4f2   : > { %v1490_v56 = vpop.f32.mrf.mxu0 }
 0x4f3   : > { %v1398_v56 = vld [vmem:[%s1940_s5] ss:$0 sm:$0xff] }
 0x4f4   : > { %v860_v57 = vpop.f32.mrf.mxu0 }
 0x4f6   : > { %v1491_v58 = vpop.f32.mrf.mxu0 }
 0x4f8   : > { %v962_v59 = vpop.f32.mrf.mxu0 }
 0x4f9   : > { %v968_v60 = vmul.f32 0.17677669, %v962_v59 }
 0x4fa   : > { %v1504_v61 = vpop.f32.mrf.mxu0 }
 0x4fb   : > { %v969_v62 = vadd.f32 %v968_v60, %v1813_v48 }
 0x4fc   : > { %v965_v63 = vpop.f32.mrf.mxu0 }
 0x4fd   : > { %v970_v0 = vsel %vm631_vm2, %v969_v62, -inf }
 0x4fe   : > { %971 = vmax.xlane.f32.xlu1 %v970_v0  ;;  %v1505_v1 = vpop.f32.mrf.mxu0 }
 0x587   : > { %v972_v2 = vpop.xlane.xlu1 %971 }
 0x588   : > { %v973_v3 = vsub.f32 %v969_v62, %v972_v2 }
 0x58a   : > { %v974_v4 = vmul.f32 1.442695, %v973_v3 }
 0x58c   : > { %1602 = vpow2.f32 %v974_v4 }
 0x599   : > { %v1603_v5 = vpop.eup %1602 }
 0x59a   : > { %v976_v6 = vsel %vm631_vm2, %v1603_v5, 0.0 }
 0x59b   : > { %977 = vadd.xlane.f32.xlu0 %v976_v6  ;;  %v1400_v6 = vld [vmem:[%s1942_s7] ss:$0 sm:$0xff] }
 0x5b1   : > { %1089 = vrot.lane.b32.xlu0 %v1756_v32, %s1625_s15 }
 0x5b5   : > { %1087 = vrot.lane.b32.xlu0 %v1762_v35, %s1625_s15  ;;  %v1591_v35 = vld [vmem:[%s1939_s4 + $0x20] sm:$0xff]  }
 0x5b6   : > { %1515 = vmatpush3.bf16.msra.mxu0 %v1591_v35 }
 0x5b7   : > { %1526 = vmatprep.subr.bf16.mxu0 %v1621_v19 }
 0x624   : > { %v978_v8 = vpop.xlane.xlu0 %977 }
 0x625   : > { %1604 = vrcp.f32 %v978_v8 }
 0x628   : > { %v1090_v12 = vpop.permute.xlu0 %1089 }
 0x629   : > { %v1095_v14 = vsel %vm582_vm1, %v1090_v12, 0 }
 0x62c   : > { %v1088_v32 = vpop.permute.xlu0 %1087 }
 0x632   : > { %v1605_v9 = vpop.eup %1604 }
 0x633   : > { %v980_v11 = vmul.f32 %v1605_v9, %v1603_v5  ;;  %v1399_v5 = vld [vmem:[%s1941_s6] ss:$0 sm:$0xff] }
 0x635   : > { %v981_v13 = vpack.c.bf16 %v980_v11, %v980_v11 }
 0x637   : > { %1509 = vmatmul.mubr.msk.bf16.vlgmr.msra.gmra.mxu1 %vm631_vm2, %v981_v13 }
 0x638   : > { %1521 = vmatpush3.bf16.xpose.msra.mxu1 %v1095_v14  ;;  %1522 = vmatprep.mubr.msk.bf16.mxu1 %vm1622_vm0, %v1621_v19 }
 0x639   : > { %1532 = vmatprep.subr.bf16.mxu1 %v1621_v19 }
 0x63f   : > { %1523 = vmatmul.mubr.msk.bf16.vlgmr.msra.gmra.mxu1 %vm582_vm1, %v1088_v32 }
 0x640   : > { %1536 = vmatprep.mubr.msk.bf16.mxu1 %vm1622_vm0, %v1621_v19  ;;  %1533 = vmatpush3.bf16.msra.mxu1 %v1592_v40 }
 0x641   : > { %1534 = vmatprep.subr.bf16.mxu1 %v1621_v19 }
 0x644   : > { %1535 = vmatpush3.bf16.msra.mxu1 %v1593_v47 }
 0x6f7   : > { %v1024_v15 = vpop.f32.mrf.mxu1 }
 0x6f8   : > { %v1030_v16 = vpack.c.bf16 %v1024_v15, %v1024_v15 }
 0x6f9   : > { %v1510_v18 = vpop.f32.mrf.mxu1 }
 0x6fa   : > { %1517 = vmatmul.mubr.msk.bf16.vlgmr.msra.gmra.mxu0 %vm582_vm1, %v1030_v16 }
 0x6fb   : > { %v1027_v20 = vpop.f32.mrf.mxu1  ;;  %1528 = vmatprep.mubr.msk.bf16.mxu0 %vm1622_vm0, %v1621_v19 }
 0x6fd   : > { %v1511_v21 = vpop.f32.mrf.mxu1 }
 0x6ff   : > { %v1131_v22 = vpop.f32.mrf.mxu1 }
 0x700   : > { %v1137_v23 = vmul.f32 0.17677669, %v1131_v22 }
 0x701   : > { %v1524_v24 = vpop.f32.mrf.mxu1 }
 0x702   : > { %v1138_v25 = vadd.f32 %v1137_v23, %v1813_v48 }
 0x703   : > { %v1134_v26 = vpop.f32.mrf.mxu1 }
 0x704   : > { %v1139_v27 = vsel %vm631_vm2, %v1138_v25, -inf }
 0x705   : > { %1140 = vmax.xlane.f32.xlu0 %v1139_v27  ;;  %v1525_v28 = vpop.f32.mrf.mxu1 }
 0x78e   : > { %v1141_v29 = vpop.xlane.xlu0 %1140 }
 0x78f   : > { %v1142_v30 = vsub.f32 %v1138_v25, %v1141_v29 }
 0x791   : > { %v1143_v31 = vmul.f32 1.442695, %v1142_v30 }
 0x793   : > { %1606 = vpow2.f32 %v1143_v31 }
 0x7a0   : > { %v1607_v33 = vpop.eup %1606 }
 0x7a1   : > { %v1145_v34 = vsel %vm631_vm2, %v1607_v33, 0.0 }
 0x7a2   : > { %1146 = vadd.xlane.f32.xlu1 %v1145_v34 }
 0x7b3   : > { %1151 = vrot.lane.b32.xlu1 %v1822_v10, %s1625_s15 }
 0x7ba   : > { %v1080_v48 = vpop.f32.mrf.mxu0 }
 0x7bb   : > { %v1086_v37 = vadd.f32 %v1080_v48, %v913_v36 }
 0x7bc   : > { %v1518_v38 = vpop.f32.mrf.mxu0 }
 0x7be   : > { %v1083_v39 = vpop.f32.mrf.mxu0 }
 0x7c0   : > { %v1519_v41 = vpop.f32.mrf.mxu0 }
 0x82b   : > { %v1147_v42 = vpop.xlane.xlu1 %1146 }
 0x82c   : > { %1608 = vrcp.f32 %v1147_v42 }
 0x82f   : > { %v1152_v43 = vpop.permute.xlu1 %1151 }
 0x830   : > { %v1157_v10 = vsel %vm647_vm3, %v1152_v43, 0 }
 0x831   : > { %1527 = vmatpush3.bf16.msra.mxu0 %v1157_v10 }
 0x839   : > { %v1609_v44 = vpop.eup %1608 }
 0x83a   : > { %v1149_v45 = vmul.f32 %v1609_v44, %v1607_v33 }
 0x83c   : > { %v1150_v46 = vpack.c.bf16 %v1149_v45, %v1149_v45 }
 0x83e   : > { %1529 = vmatmul.mubr.msk.bf16.vlgmr.msra.gmra.mxu0 %vm631_vm2, %v1150_v46 }
 0x8fe   : > { %v1193_v49 = vpop.f32.mrf.mxu0 }
 0x8ff   : > { %v1199_v50 = vpack.c.bf16 %v1193_v49, %v1193_v49 }
 0x900   : > { %v1530_v51 = vpop.f32.mrf.mxu0 }
 0x901   : > { %1537 = vmatmul.mubr.msk.bf16.vlgmr.msra.gmra.mxu1 %vm582_vm1, %v1199_v50 }
 0x902   : > { %v1196_v19 = vpop.f32.mrf.mxu0 }
 0x904   : > { %v1531_v52 = vpop.f32.mrf.mxu0 }
 0x9c1   : > { %v1249_v53 = vpop.f32.mrf.mxu1 }
 0x9c2   : > { %v1255_v54 = vadd.f32 %v1249_v53, %v1086_v37 }
 0x9c3   : > { %v1538_v55 = vpop.f32.mrf.mxu1 }
 0x9c4   : > { %v1256_v57 = vadd.f32 %v1255_v54, %v1735_v17 }
 0x9c5   : > { %v1252_v58 = vpop.f32.mrf.mxu1 }
 0x9c6   : > { %v1264_v59 = vadd.f32 %v1398_v56, %v1256_v57 }
 0x9c7   : > { %v1539_v60 = vpop.f32.mrf.mxu1 }
 0x9c8   : > { %1267 = vadd.xlane.f32.xlu1 %v1264_v59 }
 0xa51   : > { %v1268_v61 = vpop.xlane.xlu1 %1267 }
 0xa52   : > { %v1270_v62 = vmul.f32 0.0078125, %v1268_v61 }
 0xa54   : > { %v1271_v63 = vsub.f32 %v1264_v59, %v1270_v62 }
 0xa56   : > { %v1272_v0 = vmul.f32 %v1271_v63, %v1271_v63 }
 0xa58   : > { %1273 = vadd.xlane.f32.xlu0 %v1272_v0 }
 0xae1   : > { %v1274_v1 = vpop.xlane.xlu0 %1273 }
 0xae2   : > { %v1275_v2 = vmul.f32 0.0078125, %v1274_v1 }
 0xae4   : > { %v1276_v3 = vadd.f32 1e-05, %v1275_v2 }
 0xae6   : > { %1610 = vrsqrt.f32 %v1276_v3 }
 0xaf3   : > { %v1611_v4 = vpop.eup %1610 }
 0xaf4   : > { %v1278_v17 = vmul.f32 %v1611_v4, %v1271_v63 }
 0xaf6   : > { %v1285_v7 = vmul.f32 %v1399_v5, %v1278_v17 }
 0xaf8   : > { %v1292_v8 = vadd.f32 %v1400_v6, %v1285_v7 }
 0xafa   : > { %1293 = vst [vmem:[%s300_s13] sm:$0xff] %v1292_v8 }
 0xafb PF: > { %s18_s27 = sadd.s32 1, %s1618_s27  }
 0xafc   : > { %p15_p4 = scmp.ge.s32.totalorder %s18_s27, 4  }
 0xafe   :  { %17 = sbr.rel (!%p15_p4) target bundleno = 1 (0x1), region = 82 }

</bundles_post_ra>
